<compile_context>
chip_gen: v7x
topology: tpu7x:2x2x1
jax: 0.10.0
libtpu: 0.0.40
codegen_flags: <defaults>
</compile_context>

<pallas_src>
import functools

import jax
import jax.numpy as jnp
from jax import lax
from jax.experimental import pallas as pl
from jax.experimental.pallas import tpu as pltpu


def _round_up(x, m):
    return (x + m - 1) // m * m


def _leaky_relu(x, slope=0.01):
    return jnp.where(x > 0, x, slope * x)


def _sigmoid_via_tanh(x):
    # sigmoid(x) = 0.5 * (1 + tanh(x/2)) — single EUP transcendental per element.
    return 0.5 * (jnp.tanh(0.5 * x) + 1.0)


def tree_lstm_kernel(
    # inputs (tiled over nodes)
    x_ref, hl_ref, cl_ref, hr_ref, cr_ref,
    # preprocess params (padded)
    w1_ref, b1_ref, ln_g_ref, ln_b_ref, w2_ref, b2_ref,
    # fused tree-lstm gate params (padded, stacked [wx; ul; ur] -> (3*Fp, 5*Fp))
    wg_ref, bg_ref,
    # outputs
    h_out_ref, c_out_ref,
    *, feature_size: int, feature_pad: int,
):
    F, Fp = feature_size, feature_pad

    x = x_ref[...]
    hl = hl_ref[...]
    cl = cl_ref[...]
    hr = hr_ref[...]
    cr = cr_ref[...]

    # ---- preprocess: Linear -> LayerNorm -> LeakyReLU -> Linear --------------
    w1 = w1_ref[...]
    z = jnp.dot(x.astype(w1.dtype), w1,
                preferred_element_type=jnp.float32) + b1_ref[...]

    # LayerNorm statistics over the TRUE feature width only (padded lanes masked).
    lane_mask = (lax.broadcasted_iota(jnp.int32, z.shape, 1) < F).astype(jnp.float32)
    inv_f = 1.0 / F
    mu = jnp.sum(z * lane_mask, axis=-1, keepdims=True) * inv_f
    diff = (z - mu) * lane_mask
    var = jnp.sum(diff * diff, axis=-1, keepdims=True) * inv_f
    # padded lanes of ln_gamma/ln_beta are zero -> zn is exactly zero there.
    zn = (z - mu) * lax.rsqrt(var + 1e-5) * ln_g_ref[...] + ln_b_ref[...]
    zn = _leaky_relu(zn)

    w2 = w2_ref[...]
    xp = jnp.dot(zn.astype(w2.dtype), w2,
                 preferred_element_type=jnp.float32) + b2_ref[...]

    # ---- 2-branch Tree-LSTM cell (single fused gate matmul) -------------------
    # gates layout along last dim: [i, f_left, f_right, o, u], each Fp lanes wide.
    wg = wg_ref[...]
    k_in = jnp.concatenate([xp, hl, hr], axis=-1).astype(wg.dtype)   # (tile, 3*Fp)
    gates = jnp.dot(k_in, wg, preferred_element_type=jnp.float32) + bg_ref[...]

    i_g = _sigmoid_via_tanh(gates[:, 0 * Fp:1 * Fp])
    fl_g = _sigmoid_via_tanh(gates[:, 1 * Fp:2 * Fp])
    fr_g = _sigmoid_via_tanh(gates[:, 2 * Fp:3 * Fp])
    o_g = _sigmoid_via_tanh(gates[:, 3 * Fp:4 * Fp])
    u_g = jnp.tanh(gates[:, 4 * Fp:5 * Fp])

    c_new = i_g * u_g + fl_g * cl + fr_g * cr
    h_new = o_g * jnp.tanh(c_new)

    h_out_ref[...] = h_new.astype(h_out_ref.dtype)
    c_out_ref[...] = c_new.astype(c_out_ref.dtype)


def tree_lstm_forward(extra_input, left_hidden, left_cell, right_hidden, right_cell,
                      params, *, tile_n=512, matmul_dtype=jnp.float32):
    """Runs the fused preprocess + 2-ary Tree-LSTM cell.

    matmul_dtype: set to jnp.bfloat16 on v6e/v7x for ~2x MXU rate and half the
    weight/activation bytes (accumulation stays f32). Default f32 for exactness.
    """
    LANE = 128
    N, D = extra_input.shape
    F = left_hidden.shape[-1]

    Fp = _round_up(F, LANE)
    Dp = _round_up(D, LANE)
    tile_n = min(tile_n, _round_up(N, 8))
    Np = _round_up(N, tile_n)

    (w1, b1, ln_g, ln_b, w2, b2, wx, ul, ur, bg) = params

    def pad2(a, rows, cols):
        a = jnp.asarray(a, jnp.float32)
        return jnp.pad(a, ((0, rows - a.shape[0]), (0, cols - a.shape[1])))

    # ---- host-side parameter packing (zero padding keeps padded lanes inert) --
    w1p = pad2(w1, Dp, Fp).astype(matmul_dtype)
    b1p = pad2(b1, 1, Fp)
    ln_gp = pad2(ln_g, 1, Fp)   # zero gamma in padded lanes -> zn padded lanes = 0
    ln_bp = pad2(ln_b, 1, Fp)
    w2p = pad2(w2, Fp, Fp).astype(matmul_dtype)
    b2p = pad2(b2, 1, Fp)

    # Stack gate weights [wx; ul; ur] -> (3*Fp, 5*Fp) with lane-aligned gate blocks.
    wgp = jnp.zeros((3 * Fp, 5 * Fp), jnp.float32)
    for br, w in enumerate((wx, ul, ur)):
        w = jnp.asarray(w, jnp.float32)
        for g in range(5):
            wgp = wgp.at[br * Fp:br * Fp + F, g * Fp:g * Fp + F].set(
                w[:, g * F:(g + 1) * F])
    wgp = wgp.astype(matmul_dtype)
    bgp = jnp.zeros((1, 5 * Fp), jnp.float32)
    for g in range(5):
        bgp = bgp.at[:, g * Fp:g * Fp + F].set(
            jnp.asarray(bg, jnp.float32)[:, g * F:(g + 1) * F])

    # ---- node-tensor padding ---------------------------------------------------
    x_p = pad2(extra_input, Np, Dp)
    hl_p = pad2(left_hidden, Np, Fp)
    cl_p = pad2(left_cell, Np, Fp)
    hr_p = pad2(right_hidden, Np, Fp)
    cr_p = pad2(right_cell, Np, Fp)

    row_spec = lambda c: pl.BlockSpec((tile_n, c), lambda i: (i, 0))
    full_spec = lambda s: pl.BlockSpec(s, lambda i: (0, 0))

    kernel = functools.partial(tree_lstm_kernel, feature_size=F, feature_pad=Fp)

    h_pad, c_pad = pl.pallas_call(
        kernel,
        out_shape=(
            jax.ShapeDtypeStruct((Np, Fp), jnp.float32),
            jax.ShapeDtypeStruct((Np, Fp), jnp.float32),
        ),
        grid_spec=pltpu.PrefetchScalarGridSpec(
            num_scalar_prefetch=0,
            grid=(Np // tile_n,),
            in_specs=[
                row_spec(Dp),            # extra_input
                row_spec(Fp),            # left_hidden
                row_spec(Fp),            # left_cell
                row_spec(Fp),            # right_hidden
                row_spec(Fp),            # right_cell
                full_spec(w1p.shape),    # preprocess Linear1 weight
                full_spec(b1p.shape),
                full_spec(ln_gp.shape),  # LayerNorm gamma
                full_spec(ln_bp.shape),  # LayerNorm beta
                full_spec(w2p.shape),    # preprocess Linear2 weight
                full_spec(b2p.shape),
                full_spec(wgp.shape),    # fused gate weights [wx; ul; ur]
                full_spec(bgp.shape),    # gate bias
            ],
            out_specs=[row_spec(Fp), row_spec(Fp)],
        ),
        # Node axis is fully independent -> "parallel" lets v7x shard across its
        # two TensorCores; neutral on v5e/v6e.
        compiler_params=pltpu.CompilerParams(dimension_semantics=("parallel",)),
    )(x_p, hl_p, cl_p, hr_p, cr_p,
      w1p, b1p, ln_gp, ln_bp, w2p, b2p, wgp, bgp)

    return h_pad[:N, :F], c_pad[:N, :F]


def reference_forward(extra_input, hl, cl, hr, cr, params):
    """Pure-JAX reference (unpadded, three separate gate matmuls)."""
    (w1, b1, ln_g, ln_b, w2, b2, wx, ul, ur, bg) = params
    F = hl.shape[-1]
    z = extra_input @ w1 + b1
    mu = z.mean(-1, keepdims=True)
    var = ((z - mu) ** 2).mean(-1, keepdims=True)
    zn = (z - mu) / jnp.sqrt(var + 1e-5) * ln_g + ln_b
    zn = jnp.where(zn > 0, zn, 0.01 * zn)
    xp = zn @ w2 + b2
    gates = xp @ wx + hl @ ul + hr @ ur + bg
    i_g = jax.nn.sigmoid(gates[:, 0 * F:1 * F])
    fl_g = jax.nn.sigmoid(gates[:, 1 * F:2 * F])
    fr_g = jax.nn.sigmoid(gates[:, 2 * F:3 * F])
    o_g = jax.nn.sigmoid(gates[:, 3 * F:4 * F])
    u_g = jnp.tanh(gates[:, 4 * F:5 * F])
    c_new = i_g * u_g + fl_g * cl + fr_g * cr
    h_new = o_g * jnp.tanh(c_new)
    return h_new, c_new


def make_params(key, input_size, feature_size):
    F, D = feature_size, input_size
    keys = jax.random.split(key, 8)
    scale = 0.1
    w1 = scale * jax.random.normal(keys[0], (D, F), jnp.float32)
    b1 = scale * jax.random.normal(keys[1], (1, F), jnp.float32)
    ln_g = jnp.ones((1, F), jnp.float32)
    ln_b = jnp.zeros((1, F), jnp.float32)
    w2 = scale * jax.random.normal(keys[2], (F, F), jnp.float32)
    b2 = scale * jax.random.normal(keys[3], (1, F), jnp.float32)
    wx = scale * jax.random.normal(keys[4], (F, 5 * F), jnp.float32)
    ul = scale * jax.random.normal(keys[5], (F, 5 * F), jnp.float32)
    ur = scale * jax.random.normal(keys[6], (F, 5 * F), jnp.float32)
    bg = scale * jax.random.normal(keys[7], (1, 5 * F), jnp.float32)
    return (w1, b1, ln_g, ln_b, w2, b2, wx, ul, ur, bg)


if __name__ == "__main__":
    key = jax.random.PRNGKey(0)
    feature_size = 32
    input_size = 16
    n_nodes = 16

    k_in, k_hl, k_cl, k_hr, k_cr, k_p = jax.random.split(key, 6)
    extra_input = jax.random.normal(k_in, (n_nodes, input_size), jnp.float32)
    left_hidden = jax.random.normal(k_hl, (n_nodes, feature_size), jnp.float32)
    left_cell = jax.random.normal(k_cl, (n_nodes, feature_size), jnp.float32)
    right_hidden = jax.random.normal(k_hr, (n_nodes, feature_size), jnp.float32)
    right_cell = jax.random.normal(k_cr, (n_nodes, feature_size), jnp.float32)

    params = make_params(k_p, input_size, feature_size)

    node_hidden, node_cell = tree_lstm_forward(
        extra_input, left_hidden, left_cell, right_hidden, right_cell, params)
    jax.block_until_ready((node_hidden, node_cell))

    ref_h, ref_c = reference_forward(
        extra_input, left_hidden, left_cell, right_hidden, right_cell, params)
    assert jnp.allclose(node_hidden, ref_h, atol=1e-4, rtol=1e-4)
    assert jnp.allclose(node_cell, ref_c, atol=1e-4, rtol=1e-4)

    print("KERNEL_OK")
</pallas_src>

<mosaic_0001>
module attributes {stable_mosaic.version = 11 : i64} {
  func.func @tree_lstm_kernel(%arg0: i32, %arg1: memref<16x128xf32, #tpu.memory_space<vmem>>, %arg2: memref<16x128xf32, #tpu.memory_space<vmem>>, %arg3: memref<16x128xf32, #tpu.memory_space<vmem>>, %arg4: memref<16x128xf32, #tpu.memory_space<vmem>>, %arg5: memref<16x128xf32, #tpu.memory_space<vmem>>, %arg6: memref<128x128xf32, #tpu.memory_space<vmem>>, %arg7: memref<1x128xf32, #tpu.memory_space<vmem>>, %arg8: memref<1x128xf32, #tpu.memory_space<vmem>>, %arg9: memref<1x128xf32, #tpu.memory_space<vmem>>, %arg10: memref<128x128xf32, #tpu.memory_space<vmem>>, %arg11: memref<1x128xf32, #tpu.memory_space<vmem>>, %arg12: memref<384x640xf32, #tpu.memory_space<vmem>>, %arg13: memref<1x640xf32, #tpu.memory_space<vmem>>, %arg14: memref<16x128xf32, #tpu.memory_space<vmem>>, %arg15: memref<16x128xf32, #tpu.memory_space<vmem>>) attributes {dimension_semantics = [#tpu.dimension_semantics<parallel>], iteration_bounds = array<i64: 1>, scalar_prefetch = 0 : i64, scratch_operands = 0 : i64, tpu.core_type = #tpu.core_type<tc>, window_params = [{transform_indices = @transform_0, window_bounds = array<i64: 16, 128>}, {transform_indices = @transform_1, window_bounds = array<i64: 16, 128>}, {transform_indices = @transform_2, window_bounds = array<i64: 16, 128>}, {transform_indices = @transform_3, window_bounds = array<i64: 16, 128>}, {transform_indices = @transform_4, window_bounds = array<i64: 16, 128>}, {pipeline_mode = #tpu.pipeline_mode<synchronous>, transform_indices = @transform_5, window_bounds = array<i64: 128, 128>}, {pipeline_mode = #tpu.pipeline_mode<synchronous>, transform_indices = @transform_6, window_bounds = array<i64: 1, 128>}, {pipeline_mode = #tpu.pipeline_mode<synchronous>, transform_indices = @transform_7, window_bounds = array<i64: 1, 128>}, {pipeline_mode = #tpu.pipeline_mode<synchronous>, transform_indices = @transform_8, window_bounds = array<i64: 1, 128>}, {pipeline_mode = #tpu.pipeline_mode<synchronous>, transform_indices = @transform_9, window_bounds = array<i64: 128, 128>}, {pipeline_mode = #tpu.pipeline_mode<synchronous>, transform_indices = @transform_10, window_bounds = array<i64: 1, 128>}, {pipeline_mode = #tpu.pipeline_mode<synchronous>, transform_indices = @transform_11, window_bounds = array<i64: 384, 640>}, {pipeline_mode = #tpu.pipeline_mode<synchronous>, transform_indices = @transform_12, window_bounds = array<i64: 1, 640>}, {transform_indices = @transform_13, window_bounds = array<i64: 16, 128>}, {transform_indices = @transform_14, window_bounds = array<i64: 16, 128>}]} {
    %c0 = arith.constant 0 : index
    %c0_0 = arith.constant 0 : index
    %0 = vector.load %arg1[%c0, %c0_0] : memref<16x128xf32, #tpu.memory_space<vmem>>, vector<16x128xf32>
    %c0_1 = arith.constant 0 : index
    %c0_2 = arith.constant 0 : index
    %1 = vector.load %arg2[%c0_1, %c0_2] : memref<16x128xf32, #tpu.memory_space<vmem>>, vector<16x128xf32>
    %c0_3 = arith.constant 0 : index
    %c0_4 = arith.constant 0 : index
    %2 = vector.load %arg3[%c0_3, %c0_4] : memref<16x128xf32, #tpu.memory_space<vmem>>, vector<16x128xf32>
    %c0_5 = arith.constant 0 : index
    %c0_6 = arith.constant 0 : index
    %3 = vector.load %arg4[%c0_5, %c0_6] : memref<16x128xf32, #tpu.memory_space<vmem>>, vector<16x128xf32>
    %c0_7 = arith.constant 0 : index
    %c0_8 = arith.constant 0 : index
    %4 = vector.load %arg5[%c0_7, %c0_8] : memref<16x128xf32, #tpu.memory_space<vmem>>, vector<16x128xf32>
    %c0_9 = arith.constant 0 : index
    %c0_10 = arith.constant 0 : index
    %5 = vector.load %arg6[%c0_9, %c0_10] : memref<128x128xf32, #tpu.memory_space<vmem>>, vector<128x128xf32>
    %cst = arith.constant dense<0.000000e+00> : vector<16x128xf32>
    %6 = tpu.matmul %0, %5, %cst {dimension_numbers = #tpu.dot_dimension_numbers<[1], [0], [0], [1], [0, 0, 1, 1], [], []>} : vector<16x128xf32>, vector<128x128xf32>, vector<16x128xf32> -> vector<16x128xf32>
    %c0_11 = arith.constant 0 : index
    %c0_12 = arith.constant 0 : index
    %7 = vector.load %arg7[%c0_11, %c0_12] : memref<1x128xf32, #tpu.memory_space<vmem>>, vector<1x128xf32>
    %8 = vector.broadcast %7 : vector<1x128xf32> to vector<16x128xf32>
    %9 = arith.addf %6, %8 : vector<16x128xf32>
    %10 = tpu.iota {dimensions = array<i32: 1>} : vector<16x128xi32>
    %c32_i32 = arith.constant 32 : i32
    %11 = vector.broadcast %c32_i32 : i32 to vector<16x128xi32>
    %12 = arith.cmpi slt, %10, %11 : vector<16x128xi32>
    %13 = arith.extui %12 : vector<16x128xi1> to vector<16x128xi32>
    %14 = arith.sitofp %13 : vector<16x128xi32> to vector<16x128xf32>
    %15 = arith.mulf %9, %14 : vector<16x128xf32>
    %cst_13 = arith.constant dense<0.000000e+00> : vector<16xf32>
    %16 = vector.multi_reduction <add>, %15, %cst_13 [1] : vector<16x128xf32> to vector<16xf32>
    %17 = vector.shape_cast %16 : vector<16xf32> to vector<16x1xf32>
    %cst_14 = arith.constant 3.125000e-02 : f32
    %18 = vector.broadcast %cst_14 : f32 to vector<16x1xf32>
    %19 = arith.mulf %17, %18 : vector<16x1xf32>
    %20 = vector.broadcast %19 : vector<16x1xf32> to vector<16x128xf32>
    %21 = arith.subf %9, %20 : vector<16x128xf32>
    %22 = arith.mulf %21, %14 : vector<16x128xf32>
    %23 = arith.mulf %22, %22 : vector<16x128xf32>
    %cst_15 = arith.constant dense<0.000000e+00> : vector<16xf32>
    %24 = vector.multi_reduction <add>, %23, %cst_15 [1] : vector<16x128xf32> to vector<16xf32>
    %25 = vector.shape_cast %24 : vector<16xf32> to vector<16x1xf32>
    %cst_16 = arith.constant 3.125000e-02 : f32
    %26 = vector.broadcast %cst_16 : f32 to vector<16x1xf32>
    %27 = arith.mulf %25, %26 : vector<16x1xf32>
    %28 = vector.broadcast %19 : vector<16x1xf32> to vector<16x128xf32>
    %29 = arith.subf %9, %28 : vector<16x128xf32>
    %cst_17 = arith.constant 9.99999974E-6 : f32
    %30 = vector.broadcast %cst_17 : f32 to vector<16x1xf32>
    %31 = arith.addf %27, %30 : vector<16x1xf32>
    %32 = math.rsqrt %31 : vector<16x1xf32>
    %33 = vector.broadcast %32 : vector<16x1xf32> to vector<16x128xf32>
    %34 = arith.mulf %29, %33 : vector<16x128xf32>
    %c0_18 = arith.constant 0 : index
    %c0_19 = arith.constant 0 : index
    %35 = vector.load %arg8[%c0_18, %c0_19] : memref<1x128xf32, #tpu.memory_space<vmem>>, vector<1x128xf32>
    %36 = vector.broadcast %35 : vector<1x128xf32> to vector<16x128xf32>
    %37 = arith.mulf %34, %36 : vector<16x128xf32>
    %c0_20 = arith.constant 0 : index
    %c0_21 = arith.constant 0 : index
    %38 = vector.load %arg9[%c0_20, %c0_21] : memref<1x128xf32, #tpu.memory_space<vmem>>, vector<1x128xf32>
    %39 = vector.broadcast %38 : vector<1x128xf32> to vector<16x128xf32>
    %40 = arith.addf %37, %39 : vector<16x128xf32>
    %cst_22 = arith.constant 0.000000e+00 : f32
    %41 = vector.broadcast %cst_22 : f32 to vector<16x128xf32>
    %42 = arith.cmpf ogt, %40, %41 : vector<16x128xf32>
    %cst_23 = arith.constant 0.00999999977 : f32
    %43 = vector.broadcast %cst_23 : f32 to vector<16x128xf32>
    %44 = arith.mulf %43, %40 : vector<16x128xf32>
    %45 = arith.select %42, %40, %44 : vector<16x128xi1>, vector<16x128xf32>
    %c0_24 = arith.constant 0 : index
    %c0_25 = arith.constant 0 : index
    %46 = vector.load %arg10[%c0_24, %c0_25] : memref<128x128xf32, #tpu.memory_space<vmem>>, vector<128x128xf32>
    %cst_26 = arith.constant dense<0.000000e+00> : vector<16x128xf32>
    %47 = tpu.matmul %45, %46, %cst_26 {dimension_numbers = #tpu.dot_dimension_numbers<[1], [0], [0], [1], [0, 0, 1, 1], [], []>} : vector<16x128xf32>, vector<128x128xf32>, vector<16x128xf32> -> vector<16x128xf32>
    %c0_27 = arith.constant 0 : index
    %c0_28 = arith.constant 0 : index
    %48 = vector.load %arg11[%c0_27, %c0_28] : memref<1x128xf32, #tpu.memory_space<vmem>>, vector<1x128xf32>
    %49 = vector.broadcast %48 : vector<1x128xf32> to vector<16x128xf32>
    %50 = arith.addf %47, %49 : vector<16x128xf32>
    %c0_29 = arith.constant 0 : index
    %c0_30 = arith.constant 0 : index
    %51 = vector.load %arg12[%c0_29, %c0_30] : memref<384x640xf32, #tpu.memory_space<vmem>>, vector<384x640xf32>
    %52 = tpu.concatenate %50, %1, %3 in 1 : vector<16x128xf32>, vector<16x128xf32>, vector<16x128xf32> -> vector<16x384xf32>
    %cst_31 = arith.constant dense<0.000000e+00> : vector<16x640xf32>
    %53 = tpu.matmul %52, %51, %cst_31 {dimension_numbers = #tpu.dot_dimension_numbers<[1], [0], [0], [1], [0, 0, 1, 1], [], []>} : vector<16x384xf32>, vector<384x640xf32>, vector<16x640xf32> -> vector<16x640xf32>
    %c0_32 = arith.constant 0 : index
    %c0_33 = arith.constant 0 : index
    %54 = vector.load %arg13[%c0_32, %c0_33] : memref<1x640xf32, #tpu.memory_space<vmem>>, vector<1x640xf32>
    %55 = vector.broadcast %54 : vector<1x640xf32> to vector<16x640xf32>
    %56 = arith.addf %53, %55 : vector<16x640xf32>
    %57 = vector.extract_strided_slice %56 {offsets = [0, 0], sizes = [16, 128], strides = [1, 1]} : vector<16x640xf32> to vector<16x128xf32>
    %cst_34 = arith.constant 5.000000e-01 : f32
    %58 = vector.broadcast %cst_34 : f32 to vector<16x128xf32>
    %59 = arith.mulf %58, %57 : vector<16x128xf32>
    %60 = math.tanh %59 : vector<16x128xf32>
    %cst_35 = arith.constant 1.000000e+00 : f32
    %61 = vector.broadcast %cst_35 : f32 to vector<16x128xf32>
    %62 = arith.addf %60, %61 : vector<16x128xf32>
    %cst_36 = arith.constant 5.000000e-01 : f32
    %63 = vector.broadcast %cst_36 : f32 to vector<16x128xf32>
    %64 = arith.mulf %63, %62 : vector<16x128xf32>
    %65 = vector.extract_strided_slice %56 {offsets = [0, 128], sizes = [16, 128], strides = [1, 1]} : vector<16x640xf32> to vector<16x128xf32>
    %cst_37 = arith.constant 5.000000e-01 : f32
    %66 = vector.broadcast %cst_37 : f32 to vector<16x128xf32>
    %67 = arith.mulf %66, %65 : vector<16x128xf32>
    %68 = math.tanh %67 : vector<16x128xf32>
    %cst_38 = arith.constant 1.000000e+00 : f32
    %69 = vector.broadcast %cst_38 : f32 to vector<16x128xf32>
    %70 = arith.addf %68, %69 : vector<16x128xf32>
    %cst_39 = arith.constant 5.000000e-01 : f32
    %71 = vector.broadcast %cst_39 : f32 to vector<16x128xf32>
    %72 = arith.mulf %71, %70 : vector<16x128xf32>
    %73 = vector.extract_strided_slice %56 {offsets = [0, 256], sizes = [16, 128], strides = [1, 1]} : vector<16x640xf32> to vector<16x128xf32>
    %cst_40 = arith.constant 5.000000e-01 : f32
    %74 = vector.broadcast %cst_40 : f32 to vector<16x128xf32>
    %75 = arith.mulf %74, %73 : vector<16x128xf32>
    %76 = math.tanh %75 : vector<16x128xf32>
    %cst_41 = arith.constant 1.000000e+00 : f32
    %77 = vector.broadcast %cst_41 : f32 to vector<16x128xf32>
    %78 = arith.addf %76, %77 : vector<16x128xf32>
    %cst_42 = arith.constant 5.000000e-01 : f32
    %79 = vector.broadcast %cst_42 : f32 to vector<16x128xf32>
    %80 = arith.mulf %79, %78 : vector<16x128xf32>
    %81 = vector.extract_strided_slice %56 {offsets = [0, 384], sizes = [16, 128], strides = [1, 1]} : vector<16x640xf32> to vector<16x128xf32>
    %cst_43 = arith.constant 5.000000e-01 : f32
    %82 = vector.broadcast %cst_43 : f32 to vector<16x128xf32>
    %83 = arith.mulf %82, %81 : vector<16x128xf32>
    %84 = math.tanh %83 : vector<16x128xf32>
    %cst_44 = arith.constant 1.000000e+00 : f32
    %85 = vector.broadcast %cst_44 : f32 to vector<16x128xf32>
    %86 = arith.addf %84, %85 : vector<16x128xf32>
    %cst_45 = arith.constant 5.000000e-01 : f32
    %87 = vector.broadcast %cst_45 : f32 to vector<16x128xf32>
    %88 = arith.mulf %87, %86 : vector<16x128xf32>
    %89 = vector.extract_strided_slice %56 {offsets = [0, 512], sizes = [16, 128], strides = [1, 1]} : vector<16x640xf32> to vector<16x128xf32>
    %90 = math.tanh %89 : vector<16x128xf32>
    %91 = arith.mulf %64, %90 : vector<16x128xf32>
    %92 = arith.mulf %72, %2 : vector<16x128xf32>
    %93 = arith.addf %91, %92 : vector<16x128xf32>
    %94 = arith.mulf %80, %4 : vector<16x128xf32>
    %95 = arith.addf %93, %94 : vector<16x128xf32>
    %96 = math.tanh %95 : vector<16x128xf32>
    %97 = arith.mulf %88, %96 : vector<16x128xf32>
    %c0_46 = arith.constant 0 : index
    %c0_47 = arith.constant 0 : index
    %98 = vector.load %arg14[%c0_46, %c0_47] : memref<16x128xf32, #tpu.memory_space<vmem>>, vector<16x128xf32>
    tpu.vector_store %arg14[%c0_46, %c0_47], %97 {strides = array<i32>} : memref<16x128xf32, #tpu.memory_space<vmem>>, vector<16x128xf32>,
    %c0_48 = arith.constant 0 : index
    %c0_49 = arith.constant 0 : index
    %99 = vector.load %arg15[%c0_48, %c0_49] : memref<16x128xf32, #tpu.memory_space<vmem>>, vector<16x128xf32>
    tpu.vector_store %arg15[%c0_48, %c0_49], %95 {strides = array<i32>} : memref<16x128xf32, #tpu.memory_space<vmem>>, vector<16x128xf32>,
    return
  }
  func.func @transform_0(%arg0: i32) -> (i32, i32) {
    %c0_i32 = arith.constant 0 : i32
    %c0_i32_0 = arith.constant 0 : i32
    return %arg0, %c0_i32 : i32, i32
  }
  func.func @transform_1(%arg0: i32) -> (i32, i32) {
    %c0_i32 = arith.constant 0 : i32
    %c0_i32_0 = arith.constant 0 : i32
    return %arg0, %c0_i32 : i32, i32
  }
  func.func @transform_2(%arg0: i32) -> (i32, i32) {
    %c0_i32 = arith.constant 0 : i32
    %c0_i32_0 = arith.constant 0 : i32
    return %arg0, %c0_i32 : i32, i32
  }
  func.func @transform_3(%arg0: i32) -> (i32, i32) {
    %c0_i32 = arith.constant 0 : i32
    %c0_i32_0 = arith.constant 0 : i32
    return %arg0, %c0_i32 : i32, i32
  }
  func.func @transform_4(%arg0: i32) -> (i32, i32) {
    %c0_i32 = arith.constant 0 : i32
    %c0_i32_0 = arith.constant 0 : i32
    return %arg0, %c0_i32 : i32, i32
  }
  func.func @transform_5(%arg0: i32) -> (i32, i32) {
    %c0_i32 = arith.constant 0 : i32
    %c0_i32_0 = arith.constant 0 : i32
    %c0_i32_1 = arith.constant 0 : i32
    return %c0_i32, %c0_i32_0 : i32, i32
  }
  func.func @transform_6(%arg0: i32) -> (i32, i32) {
    %c0_i32 = arith.constant 0 : i32
    %c0_i32_0 = arith.constant 0 : i32
    %c0_i32_1 = arith.constant 0 : i32
    return %c0_i32, %c0_i32_0 : i32, i32
  }
  func.func @transform_7(%arg0: i32) -> (i32, i32) {
    %c0_i32 = arith.constant 0 : i32
    %c0_i32_0 = arith.constant 0 : i32
    %c0_i32_1 = arith.constant 0 : i32
    return %c0_i32, %c0_i32_0 : i32, i32
  }
  func.func @transform_8(%arg0: i32) -> (i32, i32) {
    %c0_i32 = arith.constant 0 : i32
    %c0_i32_0 = arith.constant 0 : i32
    %c0_i32_1 = arith.constant 0 : i32
    return %c0_i32, %c0_i32_0 : i32, i32
  }
  func.func @transform_9(%arg0: i32) -> (i32, i32) {
    %c0_i32 = arith.constant 0 : i32
    %c0_i32_0 = arith.constant 0 : i32
    %c0_i32_1 = arith.constant 0 : i32
    return %c0_i32, %c0_i32_0 : i32, i32
  }
  func.func @transform_10(%arg0: i32) -> (i32, i32) {
    %c0_i32 = arith.constant 0 : i32
    %c0_i32_0 = arith.constant 0 : i32
    %c0_i32_1 = arith.constant 0 : i32
    return %c0_i32, %c0_i32_0 : i32, i32
  }
  func.func @transform_11(%arg0: i32) -> (i32, i32) {
    %c0_i32 = arith.constant 0 : i32
    %c0_i32_0 = arith.constant 0 : i32
    %c0_i32_1 = arith.constant 0 : i32
    return %c0_i32, %c0_i32_0 : i32, i32
  }
  func.func @transform_12(%arg0: i32) -> (i32, i32) {
    %c0_i32 = arith.constant 0 : i32
    %c0_i32_0 = arith.constant 0 : i32
    %c0_i32_1 = arith.constant 0 : i32
    return %c0_i32, %c0_i32_0 : i32, i32
  }
  func.func @transform_13(%arg0: i32) -> (i32, i32) {
    %c0_i32 = arith.constant 0 : i32
    %c0_i32_0 = arith.constant 0 : i32
    return %arg0, %c0_i32 : i32, i32
  }
  func.func @transform_14(%arg0: i32) -> (i32, i32) {
    %c0_i32 = arith.constant 0 : i32
    %c0_i32_0 = arith.constant 0 : i32
    return %arg0, %c0_i32 : i32, i32
  }
}

</mosaic_0001>

<bundles_post_ra>
// kernel: tpu_custom_call.1
= control target key start
LH: loop header
LB: loop body
LE: loop exit
PB: predicated region body
PF: predicated region fallthrough
CT: control target
= control target key end

     0   :  { %20 = vsyncpa [#allocation3], 0  ;;  %s2367_s0 = inlined_call_operand.hbm [shape: f32[16,128], index: 0, kind: input, shape index: {}]   ;;  %s2368_s1 = inlined_call_operand.hbm [shape: f32[16,128], index: 1, kind: input, shape index: {}]   ;;  %s2369_s2 = inlined_call_operand.hbm [shape: f32[16,128], index: 2, kind: input, shape index: {}]   ;;  %s2370_s3 = inlined_call_operand.hbm [shape: f32[16,128], index: 3, kind: input, shape index: {}]   ;;  %s2371_s4 = inlined_call_operand.hbm [shape: f32[16,128], index: 4, kind: input, shape index: {}]   ;;  %s2372_s5 = inlined_call_operand.hbm [shape: f32[128,128], index: 5, kind: input, shape index: {}]   ;;  %s2373_s6 = inlined_call_operand.vmem [shape: f32[1,128], index: 6, kind: input, shape index: {}]   ;;  %s2374_s7 = inlined_call_operand.vmem [shape: f32[1,128], index: 7, kind: input, shape index: {}]   ;;  %s2375_s8 = inlined_call_operand.vmem [shape: f32[1,128], index: 8, kind: input, shape index: {}]   ;;  %s2376_s9 = inlined_call_operand.hbm [shape: f32[128,128], index: 9, kind: input, shape index: {}]   ;;  %s2377_s10 = inlined_call_operand.vmem [shape: f32[1,128], index: 10, kind: input, shape index: {}]   ;;  %s2378_s11 = inlined_call_operand.hbm [shape: f32[384,640], index: 11, kind: input, shape index: {}]   ;;  %s2379_s12 = inlined_call_operand.vmem [shape: f32[1,640], index: 12, kind: input, shape index: {}]   ;;  %s2380_s13 = inlined_call_operand.hbm [shape: f32[16,128], index: 13, kind: output, shape index: {0}]   ;;  %s2381_s14 = inlined_call_operand.hbm [shape: f32[16,128], index: 14, kind: output, shape index: {1}]  }
   0x1   :  { %21 = vsyncpa [#allocation6], 0 }
   0x2   :  { %22 = vsyncpa [#allocation9], 0 }
   0x3   :  { %23 = vsyncpa [#allocation12], 0 }
   0x4   :  { %24 = vsyncpa [#allocation15], 0 }
   0x5   :  { %25 = vsyncpa [#allocation4], 0 }
   0x6   :  { %26 = vsyncpa [#allocation18], 0  ;;  %s2047_s29 = smov [#allocation5]   ;;  %s2048_s15 = smov [#allocation8]  }
   0x7   :  { %s44_s30 = sshll.u32 %s2047_s29, 4  ;;  %s68_s16 = sshll.u32 %s2048_s15, 4  ;;  %s45_s30 = int_to_ptr.vmem [resolvable:$true] %s44_s30  ;;  %s2137_s16 = int_to_ptr.vmem [resolvable:$true] %s68_s16 }
   0x8   :  { %s1813_s19 = scalar_lea.hbm %s2368_s1, 256 }
   0x9   :  { %p1814_p0 = scmp.ne.s32.totalorder %s2368_s1, %s1813_s19  ;;  %p1817_p1 = scmp.lt.u32.totalorder %s1813_s19, %s2368_s1 }
   0xb   :  { %p1819_p2 = pnand %p1817_p1, %p1814_p0 }
   0xd   :  { %1822 = shalt.err (!%p1819_p2)
}
   0xe   :  { %s1823_s24 = scalar_lea.vmem %s45_s30, 256  ;;  %p1828_p4 = scmp.lt.s32.totalorder %s45_s30, %s45_s30 }
   0xf   :  { %p1824_p3 = scmp.ne.s32.totalorder %s45_s30, %s1823_s24  ;;  %p1829_p5 = scmp.lt.s32.totalorder %s1823_s24, %s1823_s24 }
  0x11   :  { %p1830_p6 = por %p1829_p5, %p1828_p4 }
  0x13   :  { %p1831_p7 = pnand %p1830_p6, %p1824_p3 }
  0x15   :  { %1834 = shalt.err (!%p1831_p7)
}
  0x16   :  { %s2049_s25 = smov 128   ;;  %s2050_s26 = smov 8  }
  0x17   :  { %50 = dma.hbm_to_vmem [thread:$0]  %s2368_s1, 256, %s45_s30, [#allocation6], %s2049_s25, %s2049_s25, %s2050_s26  }
  0x18   :  { %s1835_s17 = scalar_lea.hbm %s2370_s3, 256 }
  0x19   :  { %p1836_p8 = scmp.ne.s32.totalorder %s2370_s3, %s1835_s17  ;;  %p1839_p9 = scmp.lt.u32.totalorder %s1835_s17, %s2370_s3 }
  0x1b   :  { %p1841_p10 = pnand %p1839_p9, %p1836_p8 }
  0x1d   :  { %1844 = shalt.err (!%p1841_p10)
}
  0x1e   :  { %s1845_s22 = scalar_lea.vmem %s2137_s16, 256  ;;  %p1850_p12 = scmp.lt.s32.totalorder %s2137_s16, %s2137_s16 }
  0x1f   :  { %p1846_p11 = scmp.ne.s32.totalorder %s2137_s16, %s1845_s22  ;;  %p1851_p13 = scmp.lt.s32.totalorder %s1845_s22, %s1845_s22 }
  0x21   :  { %p1852_p0 = por %p1851_p13, %p1850_p12 }
  0x23   :  { %p1853_p1 = pnand %p1852_p0, %p1846_p11 }
  0x25   :  { %1856 = shalt.err (!%p1853_p1)
}
  0x26   :  { %74 = dma.hbm_to_vmem [thread:$0]  %s2370_s3, 256, %s2137_s16, [#allocation9], %s2049_s25, %s2049_s25, %s2050_s26  }
  0x27   :  { %s2051_s23 = smov [#allocation11]   ;;  %s2052_s27 = smov [#allocation2]  }
  0x28   :  { %s92_s24 = sshll.u32 %s2051_s23, 4  ;;  %s32_s28 = sshll.u32 %s2052_s27, 4  ;;  %s93_s24 = int_to_ptr.vmem [resolvable:$true] %s92_s24  ;;  %s2174_s28 = int_to_ptr.vmem [resolvable:$true] %s32_s28 }
  0x29   :  { %s1857_s17 = scalar_lea.hbm %s2372_s5, 2048 }
  0x2a   :  { %p1858_p2 = scmp.ne.s32.totalorder %s2372_s5, %s1857_s17  ;;  %p1861_p3 = scmp.lt.u32.totalorder %s1857_s17, %s2372_s5 }
  0x2c   :  { %p1863_p4 = pnand %p1861_p3, %p1858_p2 }
  0x2e   :  { %1866 = shalt.err (!%p1863_p4)
}
  0x2f   :  { %s1867_s3 = scalar_lea.vmem %s93_s24, 2048  ;;  %p1872_p6 = scmp.lt.s32.totalorder %s93_s24, %s93_s24 }
  0x30   :  { %p1868_p5 = scmp.ne.s32.totalorder %s93_s24, %s1867_s3  ;;  %p1873_p7 = scmp.lt.s32.totalorder %s1867_s3, %s1867_s3 }
  0x32   :  { %p1874_p8 = por %p1873_p7, %p1872_p6 }
  0x34   :  { %p1875_p9 = pnand %p1874_p8, %p1868_p5 }
  0x36   :  { %1878 = shalt.err (!%p1875_p9)
}
  0x37   :  { %98 = dma.hbm_to_vmem [thread:$0]  %s2372_s5, 2048, %s93_s24, [#allocation12], %s2049_s25, %s2049_s25, %s2050_s26  }
  0x38   :  { %s1879_s23 = scalar_lea.hbm %s2367_s0, 256 }
  0x39   :  { %p1880_p10 = scmp.ne.s32.totalorder %s2367_s0, %s1879_s23  ;;  %p1883_p11 = scmp.lt.u32.totalorder %s1879_s23, %s2367_s0 }
  0x3b   :  { %p1885_p12 = pnand %p1883_p11, %p1880_p10 }
  0x3d   :  { %1888 = shalt.err (!%p1885_p12)
}
  0x3e   :  { %s1889_s18 = scalar_lea.vmem %s2174_s28, 256  ;;  %p1894_p0 = scmp.lt.s32.totalorder %s2174_s28, %s2174_s28 }
  0x3f   :  { %p1890_p13 = scmp.ne.s32.totalorder %s2174_s28, %s1889_s18  ;;  %p1895_p1 = scmp.lt.s32.totalorder %s1889_s18, %s1889_s18 }
  0x41   :  { %p1896_p2 = por %p1895_p1, %p1894_p0 }
  0x43   :  { %p1897_p3 = pnand %p1896_p2, %p1890_p13 }
  0x45   :  { %1900 = shalt.err (!%p1897_p3)
}
  0x46   :  { %38 = dma.hbm_to_vmem [thread:$0]  %s2367_s0, 256, %s2174_s28, [#allocation3], %s2049_s25, %s2049_s25, %s2050_s26  }
  0x47   :  { %s2053_s19 = smov [#allocation7]   ;;  %s2054_s21 = smov [#allocation10]  }
  0x48   :  { %s56_s20 = sshll.u32 %s2053_s19, 4  ;;  %s80_s3 = sshll.u32 %s2054_s21, 4  ;;  %s57_s20 = int_to_ptr.vmem [resolvable:$true] %s56_s20  ;;  %s2211_s3 = int_to_ptr.vmem [resolvable:$true] %s80_s3 }
  0x49   :  { %s1901_s1 = scalar_lea.hbm %s2369_s2, 256 }
  0x4a   :  { %p1902_p4 = scmp.ne.s32.totalorder %s2369_s2, %s1901_s1  ;;  %p1905_p5 = scmp.lt.u32.totalorder %s1901_s1, %s2369_s2 }
  0x4c   :  { %p1907_p6 = pnand %p1905_p5, %p1902_p4 }
  0x4e   :  { %1910 = shalt.err (!%p1907_p6)
}
  0x4f   :  { %s1911_s0 = scalar_lea.vmem %s57_s20, 256  ;;  %p1916_p8 = scmp.lt.s32.totalorder %s57_s20, %s57_s20 }
  0x50   :  { %p1912_p7 = scmp.ne.s32.totalorder %s57_s20, %s1911_s0  ;;  %p1917_p9 = scmp.lt.s32.totalorder %s1911_s0, %s1911_s0 }
  0x52   :  { %p1918_p10 = por %p1917_p9, %p1916_p8 }
  0x54   :  { %p1919_p11 = pnand %p1918_p10, %p1912_p7 }
  0x56   :  { %1922 = shalt.err (!%p1919_p11)
}
  0x57   :  { %62 = dma.hbm_to_vmem [thread:$0]  %s2369_s2, 256, %s57_s20, [#allocation6], %s2049_s25, %s2049_s25, %s2050_s26  }
  0x58   :  { %s1923_s5 = scalar_lea.hbm %s2371_s4, 256 }
  0x59   :  { %p1924_p12 = scmp.ne.s32.totalorder %s2371_s4, %s1923_s5  ;;  %p1927_p13 = scmp.lt.u32.totalorder %s1923_s5, %s2371_s4 }
  0x5b   :  { %p1929_p0 = pnand %p1927_p13, %p1924_p12 }
  0x5d   :  { %1932 = shalt.err (!%p1929_p0)
}
  0x5e   :  { %s1933_s22 = scalar_lea.vmem %s2211_s3, 256  ;;  %p1938_p2 = scmp.lt.s32.totalorder %s2211_s3, %s2211_s3 }
  0x5f   :  { %p1934_p1 = scmp.ne.s32.totalorder %s2211_s3, %s1933_s22  ;;  %p1939_p3 = scmp.lt.s32.totalorder %s1933_s22, %s1933_s22 }
  0x61   :  { %p1940_p4 = por %p1939_p3, %p1938_p2 }
  0x63   :  { %p1941_p5 = pnand %p1940_p4, %p1934_p1 }
  0x65   :  { %1944 = shalt.err (!%p1941_p5)
}
  0x66   :  { %86 = dma.hbm_to_vmem [thread:$0]  %s2371_s4, 256, %s2211_s3, [#allocation9], %s2049_s25, %s2049_s25, %s2050_s26  }
  0x67   :  { %s2055_s1 = smov [#allocation13]   ;;  %s2056_s23 = smov [#allocation14]  }
  0x68   :  { %s110_s30 = sshll.u32 %s2055_s1, 4  ;;  %s124_s27 = sshll.u32 %s2056_s23, 4  ;;  %s111_s30 = int_to_ptr.vmem [resolvable:$true] %s110_s30  ;;  %s2248_s27 = int_to_ptr.vmem [resolvable:$true] %s124_s27 }
  0x69   :  { %s1945_s28 = scalar_lea.hbm %s2376_s9, 2048 }
  0x6a   :  { %p1946_p6 = scmp.ne.s32.totalorder %s2376_s9, %s1945_s28  ;;  %p1949_p7 = scmp.lt.u32.totalorder %s1945_s28, %s2376_s9 }
  0x6c   :  { %p1951_p8 = pnand %p1949_p7, %p1946_p6 }
  0x6e   :  { %1954 = shalt.err (!%p1951_p8)
}
  0x6f   :  { %s1955_s4 = scalar_lea.vmem %s111_s30, 2048  ;;  %p1960_p10 = scmp.lt.s32.totalorder %s111_s30, %s111_s30 }
  0x70   :  { %p1956_p9 = scmp.ne.s32.totalorder %s111_s30, %s1955_s4  ;;  %p1961_p11 = scmp.lt.s32.totalorder %s1955_s4, %s1955_s4 }
  0x72   :  { %p1962_p12 = por %p1961_p11, %p1960_p10 }
  0x74   :  { %p1963_p13 = pnand %p1962_p12, %p1956_p9 }
  0x76   :  { %1966 = shalt.err (!%p1963_p13)
}
  0x77   :  { %116 = dma.hbm_to_vmem [thread:$0]  %s2376_s9, 2048, %s111_s30, [#allocation12], %s2049_s25, %s2049_s25, %s2050_s26  }
  0x78   :  { %s1967_s16 = scalar_lea.hbm %s2378_s11, 30720 }
  0x79   :  { %p1968_p0 = scmp.ne.s32.totalorder %s2378_s11, %s1967_s16  ;;  %p1971_p1 = scmp.lt.u32.totalorder %s1967_s16, %s2378_s11 }
  0x7b   :  { %p1973_p2 = pnand %p1971_p1, %p1968_p0 }
  0x7d   :  { %1976 = shalt.err (!%p1973_p2)
}
  0x7e   :  { %s1977_s23 = scalar_lea.vmem %s2248_s27, 30720  ;;  %p1982_p4 = scmp.lt.s32.totalorder %s2248_s27, %s2248_s27 }
  0x7f   :  { %p1978_p3 = scmp.ne.s32.totalorder %s2248_s27, %s1977_s23  ;;  %p1983_p5 = scmp.lt.s32.totalorder %s1977_s23, %s1977_s23 }
  0x81   :  { %p1984_p6 = por %p1983_p5, %p1982_p4 }
  0x83   :  { %p1985_p7 = pnand %p1984_p6, %p1978_p3 }
  0x85   :  { %1988 = shalt.err (!%p1985_p7)
}
  0x86   :  { %s2057_s9 = smov 640   ;;  %s2058_s30 = smov 40  }
  0x87   :  { %130 = dma.hbm_to_vmem [thread:$0]  %s2378_s11, 30720, %s2248_s27, [#allocation15], %s2057_s9, %s2057_s9, %s2058_s30  }
  0x88   :  { %2033 = dma.done.wait [#allocation3], 256  }
  0x89   :  { %2034 = vsyncadd [#allocation3], 4294967040 }
  0x8a   :  { %2035 = dma.done.wait [#allocation6], 512  }
  0x8b   :  { %2036 = vsyncadd [#allocation6], 4294966784 }
  0x8c   :  { %2037 = dma.done.wait [#allocation9], 512  }
  0x8d   :  { %2038 = vsyncadd [#allocation9], 4294966784 }
  0x8e   :  { %2039 = dma.done.wait [#allocation12], 4096  }
  0x8f   :  { %2040 = vsyncadd [#allocation12], 4294963200 }
  0x90   :  { %2041 = dma.done.wait [#allocation15], 30720  }
  0x91   :  { %2042 = vsyncadd [#allocation15], 4294936576  ;;  %v167_v0 = vld [vmem:[#allocation11] sm:$0xff]  ;;  %v168_v1 = vld [vmem:[#allocation11 + $0x8] sm:$0xff]  ;;  %v265_v26 = vlaneseq  ;;  %v2059_v31 = vmov 0.0  }
  0x92   :  { %v169_v2 = vld [vmem:[#allocation11 + $0x10] sm:$0xff]  ;;  %v1434_v3 = vpack.c.bf16 %v168_v1, %v167_v0  ;;  %v170_v4 = vld [vmem:[#allocation11 + $0x18] sm:$0xff]  ;;  %v171_v6 = vld [vmem:[#allocation11 + $0x20] sm:$0xff] }
  0x93   :  { %v1438_v5 = vpack.c.bf16 %v170_v4, %v169_v2  ;;  %v172_v7 = vld [vmem:[#allocation11 + $0x28] sm:$0xff]  ;;  %v157_v9 = vld [vmem:[#allocation2] sm:$0xff]  ;;  %v174_v11 = vld [vmem:[#allocation11 + $0x38] sm:$0xff]  ;;  %v266_v27 = vand.u32 127, %v265_v26 }
  0x94   :  { %1435 = vmatprep.subr.bf16.mxu0 %v1434_v3  ;;  %v1442_v8 = vpack.c.bf16 %v172_v7, %v171_v6  ;;  %v173_v10 = vld [vmem:[#allocation11 + $0x30] sm:$0xff]  ;;  %1361 = vmatprep.mubr.f32.mxu0 %v157_v9  ;;  %v175_v13 = vld [vmem:[#allocation11 + $0x40] sm:$0xff]  ;;  %v176_v14 = vld [vmem:[#allocation11 + $0x48] sm:$0xff] }
  0x95   :  { %1437 = vmatpush3.bf16.msra.mxu0 %v1434_v3  ;;  %v1446_v12 = vpack.c.bf16 %v174_v11, %v173_v10  ;;  %v1450_v15 = vpack.c.bf16 %v176_v14, %v175_v13  ;;  %v177_v16 = vld [vmem:[#allocation11 + $0x50] sm:$0xff]  ;;  %v178_v17 = vld [vmem:[#allocation11 + $0x58] sm:$0xff]  ;;  %v179_v19 = vld [vmem:[#allocation11 + $0x60] sm:$0xff]  ;;  %vm267_vm0 = vcmp.lt.s32.totalorder %v266_v27, 32 }
  0x96   :  { %1439 = vmatprep.subr.bf16.mxu0 %v1438_v5  ;;  %v1454_v18 = vpack.c.bf16 %v178_v17, %v177_v16  ;;  %v180_v20 = vld [vmem:[#allocation11 + $0x68] sm:$0xff]  ;;  %v181_v22 = vld [vmem:[#allocation11 + $0x70] sm:$0xff]  ;;  %v182_v23 = vld [vmem:[#allocation11 + $0x78] sm:$0xff]  ;;  %v1233_v32 = vsel %vm267_vm0, 1.0, %v2059_v31 }
  0x97   :  { %v1458_v21 = vpack.c.bf16 %v180_v20, %v179_v19  ;;  %v1462_v24 = vpack.c.bf16 %v182_v23, %v181_v22  ;;  %v158_v25 = vld [vmem:[#allocation2 + $0x8] sm:$0xff]  ;;  %v1232_v28 = vld [vmem:[%s2373_s6] ss:$0 sm:$0xff]  ;;  %v320_v37 = vld [vmem:[#allocation13] sm:$0xff] }
  0x98   :  { %v321_v38 = vld [vmem:[#allocation13 + $0x8] sm:$0xff]  ;;  %v322_v50 = vld [vmem:[#allocation13 + $0x10] sm:$0xff]  ;;  %v323_v51 = vld [vmem:[#allocation13 + $0x18] sm:$0xff] }
  0x99   :  { %1441 = vmatpush3.bf16.msra.mxu0 %v1438_v5  ;;  %v1466_v39 = vpack.c.bf16 %v321_v38, %v320_v37  ;;  %v1470_v52 = vpack.c.bf16 %v323_v51, %v322_v50  ;;  %v324_v53 = vld [vmem:[#allocation13 + $0x20] sm:$0xff]  ;;  %v325_v54 = vld [vmem:[#allocation13 + $0x28] sm:$0xff]  ;;  %v326_v56 = vld [vmem:[#allocation13 + $0x30] sm:$0xff] }
  0x9a   :  { %1443 = vmatprep.subr.bf16.mxu0 %v1442_v8  ;;  %v1474_v55 = vpack.c.bf16 %v325_v54, %v324_v53  ;;  %v327_v57 = vld [vmem:[#allocation13 + $0x38] sm:$0xff]  ;;  %v328_v59 = vld [vmem:[#allocation13 + $0x40] sm:$0xff]  ;;  %v329_v60 = vld [vmem:[#allocation13 + $0x48] sm:$0xff] }
  0x9b   :  { %1467 = vmatprep.subr.bf16.mxu1 %v1466_v39  ;;  %v1478_v58 = vpack.c.bf16 %v327_v57, %v326_v56  ;;  %v330_v61 = vld [vmem:[#allocation13 + $0x50] sm:$0xff]  ;;  %v1482_v62 = vpack.c.bf16 %v329_v60, %v328_v59  ;;  %v331_v63 = vld [vmem:[#allocation13 + $0x58] sm:$0xff]  ;;  %v332_v1 = vld [vmem:[#allocation13 + $0x60] sm:$0xff] }
  0x9c   :  { %1469 = vmatpush3.bf16.msra.mxu1 %v1466_v39  ;;  %v1486_v0 = vpack.c.bf16 %v331_v63, %v330_v61  ;;  %v333_v2 = vld [vmem:[#allocation13 + $0x68] sm:$0xff]  ;;  %v334_v4 = vld [vmem:[#allocation13 + $0x70] sm:$0xff]  ;;  %v335_v5 = vld [vmem:[#allocation13 + $0x78] sm:$0xff] }
  0x9d   :  { %1445 = vmatpush3.bf16.msra.mxu0 %v1442_v8  ;;  %1471 = vmatprep.subr.bf16.mxu1 %v1470_v52  ;;  %v1490_v3 = vpack.c.bf16 %v333_v2, %v332_v1  ;;  %v1494_v6 = vpack.c.bf16 %v335_v5, %v334_v4  ;;  %v419_v7 = vld [vmem:[#allocation14 + $0x8] sm:$0xff]  ;;  %v424_v8 = vld [vmem:[#allocation14 + $0x30] sm:$0xff]  ;;  %v421_v9 = vld [vmem:[#allocation14 + $0x18] sm:$0xff] }
  0x9e   :  { %1447 = vmatprep.subr.bf16.mxu0 %v1446_v12  ;;  %v1498_v10 = vpack.c.bf16 %v424_v8, %v419_v7  ;;  %v426_v11 = vld [vmem:[#allocation14 + $0x40] sm:$0xff]  ;;  %v423_v13 = vld [vmem:[#allocation14 + $0x28] sm:$0xff]  ;;  %v429_v16 = vld [vmem:[#allocation14 + $0x58] sm:$0xff] }
  0x9f   :  { %v1594_v14 = vpack.c.bf16 %v426_v11, %v421_v9  ;;  %v434_v17 = vld [vmem:[#allocation14 + $0x80] sm:$0xff]  ;;  %v428_v19 = vld [vmem:[#allocation14 + $0x50] sm:$0xff]  ;;  %v433_v20 = vld [vmem:[#allocation14 + $0x78] sm:$0xff] }
  0xa0   :  { %1473 = vmatpush3.bf16.msra.mxu1 %v1470_v52  ;;  %v439_v22 = vld [vmem:[#allocation14 + $0xa8] sm:$0xff]  ;;  %v444_v23 = vld [vmem:[#allocation14 + $0xd0] sm:$0xff]  ;;  %v458_v39 = vld [vmem:[#allocation14 + $0x140] sm:$0xff] }
  0xa1   :  { %1449 = vmatpush3.bf16.msra.mxu0 %v1446_v12  ;;  %1475 = vmatprep.subr.bf16.mxu1 %v1474_v55  ;;  %v418_v12 = vld [vmem:[#allocation14] sm:$0xff]  ;;  %v443_v27 = vld [vmem:[#allocation14 + $0xc8] sm:$0xff]  ;;  %v464_v37 = vld [vmem:[#allocation14 + $0x170] sm:$0xff] }
  0xa2   :  { %1451 = vmatprep.subr.bf16.mxu0 %v1450_v15  ;;  %v479_v50 = vld [vmem:[#allocation14 + $0x1e8] sm:$0xff]  ;;  %v484_v51 = vld [vmem:[#allocation14 + $0x210] sm:$0xff]  ;;  %v478_v53 = vld [vmem:[#allocation14 + $0x1e0] sm:$0xff] }
  0xa3   :  { %v1522_v52 = vpack.c.bf16 %v484_v51, %v479_v50  ;;  %v483_v54 = vld [vmem:[#allocation14 + $0x208] sm:$0xff]  ;;  %v489_v56 = vld [vmem:[#allocation14 + $0x238] sm:$0xff]  ;;  %v494_v57 = vld [vmem:[#allocation14 + $0x260] sm:$0xff] }
  0xa4   :  { %1477 = vmatpush3.bf16.msra.mxu1 %v1474_v55  ;;  %v1524_v55 = vpack.c.bf16 %v483_v54, %v478_v53  ;;  %v488_v59 = vld [vmem:[#allocation14 + $0x230] sm:$0xff]  ;;  %v493_v60 = vld [vmem:[#allocation14 + $0x258] sm:$0xff]  ;;  %v498_v1 = vld [vmem:[#allocation14 + $0x280] sm:$0xff] }
  0xa5   :  { %1453 = vmatpush3.bf16.msra.mxu0 %v1450_v15  ;;  %1479 = vmatprep.subr.bf16.mxu1 %v1478_v58  ;;  %v1500_v15 = vpack.c.bf16 %v423_v13, %v418_v12  ;;  %v1528_v61 = vpack.c.bf16 %v493_v60, %v488_v59  ;;  %v504_v63 = vld [vmem:[#allocation14 + $0x2b0] sm:$0xff]  ;;  %v503_v2 = vld [vmem:[#allocation14 + $0x2a8] sm:$0xff]  ;;  %v509_v4 = vld [vmem:[#allocation14 + $0x2d8] sm:$0xff] }
  0xa6   :  { %1455 = vmatprep.subr.bf16.mxu0 %v1454_v18  ;;  %v514_v5 = vld [vmem:[#allocation14 + $0x300] sm:$0xff]  ;;  %v508_v7 = vld [vmem:[#allocation14 + $0x2d0] sm:$0xff]  ;;  %v513_v8 = vld [vmem:[#allocation14 + $0x2f8] sm:$0xff] }
  0xa7   :  { %v1536_v9 = vpack.c.bf16 %v513_v8, %v508_v7  ;;  %v524_v11 = vld [vmem:[#allocation14 + $0x350] sm:$0xff]  ;;  %v518_v13 = vld [vmem:[#allocation14 + $0x320] sm:$0xff]  ;;  %v435_v8 = vld [vmem:[#allocation14 + $0x88] sm:$0xff] }
  0xa8   :  { %1481 = vmatpush3.bf16.msra.mxu1 %v1478_v58  ;;  %v1526_v58 = vpack.c.bf16 %v494_v57, %v489_v56  ;;  %v1234_v54 = vld [vmem:[%s2374_s7] ss:$0 sm:$0xff]  ;;  %v430_v7 = vld [vmem:[#allocation14 + $0x60] sm:$0xff] }
  0xa9   :  { %1457 = vmatpush3.bf16.msra.mxu0 %v1454_v18  ;;  %1483 = vmatprep.subr.bf16.mxu1 %v1482_v62  ;;  %v1502_v18 = vpack.c.bf16 %v434_v17, %v429_v16  ;;  %v529_v16 = vld [vmem:[#allocation14 + $0x378] sm:$0xff]  ;;  %v534_v17 = vld [vmem:[#allocation14 + $0x3a0] sm:$0xff]  ;;  %v1235_v56 = vld [vmem:[%s2375_s8] ss:$0 sm:$0xff] }
  0xaa   :  { %1459 = vmatprep.subr.bf16.mxu0 %v1458_v21 }
  0xac   :  { %1485 = vmatpush3.bf16.msra.mxu1 %v1482_v62  ;;  %v499_v62 = vld [vmem:[#allocation14 + $0x288] sm:$0xff] }
  0xad   :  { %1461 = vmatpush3.bf16.msra.mxu0 %v1458_v21  ;;  %1487 = vmatprep.subr.bf16.mxu1 %v1486_v0  ;;  %v1504_v21 = vpack.c.bf16 %v433_v20, %v428_v19  ;;  %v528_v19 = vld [vmem:[#allocation14 + $0x370] sm:$0xff]  ;;  %v533_v20 = vld [vmem:[#allocation14 + $0x398] sm:$0xff] }
  0xae   :  { %1463 = vmatprep.subr.bf16.mxu0 %v1462_v24 }
  0xb0   :  { %1489 = vmatpush3.bf16.msra.mxu1 %v1486_v0  ;;  %v1530_v0 = vpack.c.bf16 %v504_v63, %v499_v62  ;;  %v420_v63 = vld [vmem:[#allocation14 + $0x10] sm:$0xff] }
  0xb1   :  { %1465 = vmatpush3.bf16.msra.mxu0 %v1462_v24  ;;  %1491 = vmatprep.subr.bf16.mxu1 %v1490_v3  ;;  %v1506_v24 = vpack.c.bf16 %v444_v23, %v439_v22  ;;  %v539_v22 = vld [vmem:[#allocation14 + $0x3c8] sm:$0xff]  ;;  %v544_v23 = vld [vmem:[#allocation14 + $0x3f0] sm:$0xff] }
  0xb2   :  { %1499 = vmatprep.subr.bf16.mxu0 %v1498_v10  ;;  %v519_v10 = vld [vmem:[#allocation14 + $0x328] sm:$0xff] }
  0xb3   :  { %v1538_v12 = vpack.c.bf16 %v524_v11, %v519_v10  ;;  %v441_v10 = vld [vmem:[#allocation14 + $0xb8] sm:$0xff]  ;;  %v446_v11 = vld [vmem:[#allocation14 + $0xe0] sm:$0xff] }
  0xb4   :  { %1362 = vmatmul.mubr.f32.vlgmr.msra.gmra.mrb[0].mxu0 %v158_v25  ;;  %1493 = vmatpush3.bf16.msra.mxu1 %v1490_v3  ;;  %v438_v25 = vld [vmem:[#allocation14 + $0xa0] sm:$0xff]  ;;  %v1532_v3 = vpack.c.bf16 %v503_v2, %v498_v1 }
  0xb5   :  { %1495 = vmatprep.subr.bf16.mxu1 %v1494_v6  ;;  %1501 = vmatpush1.bf16.msra.mxu0 %v1500_v15 }
  0xb6   :  { %1503 = vmatprep.subr.bf16.mxu0 %v1502_v18  ;;  %v1542_v18 = vpack.c.bf16 %v534_v17, %v529_v16  ;;  %v456_v16 = vld [vmem:[#allocation14 + $0x130] sm:$0xff] }
  0xb8   :  { %1497 = vmatpush3.bf16.msra.mxu1 %v1494_v6  ;;  %v1534_v6 = vpack.c.bf16 %v514_v5, %v509_v4  ;;  %v436_v4 = vld [vmem:[#allocation14 + $0x90] sm:$0xff] }
  0xb9   :  { %1595 = vmatprep.subr.bf16.mxu1 %v1594_v14  ;;  %1505 = vmatpush1.bf16.msra.mxu0 %v1504_v21  ;;  %v523_v14 = vld [vmem:[#allocation14 + $0x348] sm:$0xff]  ;;  %v1544_v21 = vpack.c.bf16 %v533_v20, %v528_v19  ;;  %v450_v19 = vld [vmem:[#allocation14 + $0x100] sm:$0xff] }
  0xba   :  { %1507 = vmatprep.subr.bf16.mxu0 %v1506_v24  ;;  %v1540_v15 = vpack.c.bf16 %v523_v14, %v518_v13  ;;  %v1546_v24 = vpack.c.bf16 %v544_v23, %v539_v22  ;;  %v440_v13 = vld [vmem:[#allocation14 + $0xb0] sm:$0xff]  ;;  %v445_v14 = vld [vmem:[#allocation14 + $0xd8] sm:$0xff]  ;;  %v455_v20 = vld [vmem:[#allocation14 + $0x128] sm:$0xff] }
  0xbb   :  { %v1604_v17 = vpack.c.bf16 %v445_v14, %v440_v13  ;;  %v466_v22 = vld [vmem:[#allocation14 + $0x180] sm:$0xff]  ;;  %v1608_v23 = vpack.c.bf16 %v455_v20, %v450_v19  ;;  %v551_v13 = vld [vmem:[#allocation14 + $0x428] sm:$0xff]  ;;  %v556_v14 = vld [vmem:[#allocation14 + $0x450] sm:$0xff] }
  0xbc   :  { %v561_v19 = vld [vmem:[#allocation14 + $0x478] sm:$0xff]  ;;  %v566_v20 = vld [vmem:[#allocation14 + $0x4a0] sm:$0xff] }
 0x187   :  { %v1363_v29 = vpop.f32.mrb[0].mxu0 }
 0x188   :  { %v256_v30 = vpop.f32.mrb[1].mxu0  ;;  %v262_v34 = vadd.f32 %v1363_v29, %v1232_v28  ;;  %v449_v29 = vld [vmem:[#allocation14 + $0xf8] sm:$0xff] }
 0x189   :  { %v257_v33 = vadd.f32 %v1232_v28, %v256_v30  ;;  %v1508_v28 = vpack.c.bf16 %v443_v27, %v438_v25  ;;  %v454_v30 = vld [vmem:[#allocation14 + $0x120] sm:$0xff]  ;;  %v543_v27 = vld [vmem:[#allocation14 + $0x3e8] sm:$0xff] }
 0x18a   :  { %v271_v36 = vmul.f32 %v1233_v32, %v262_v34  ;;  %v538_v25 = vld [vmem:[#allocation14 + $0x3c0] sm:$0xff] }
 0x18b   :  { %v270_v35 = vmul.f32 %v1233_v32, %v257_v33  ;;  %1509 = vmatpush1.bf16.msra.mxu0 %v1508_v28  ;;  %v1548_v28 = vpack.c.bf16 %v543_v27, %v538_v25  ;;  %v460_v25 = vld [vmem:[#allocation14 + $0x150] sm:$0xff]  ;;  %v465_v27 = vld [vmem:[#allocation14 + $0x178] sm:$0xff] }
 0x18d   :  { %272 = vadd.xlane.f32.xlu0 %v270_v35 }
 0x191   :  { %274 = vadd.xlane.f32.xlu0 %v271_v36  ;;  %v459_v36 = vld [vmem:[#allocation14 + $0x148] sm:$0xff] }
 0x192   :  { %v1514_v38 = vpack.c.bf16 %v464_v37, %v459_v36  ;;  %v559_v36 = vld [vmem:[#allocation14 + $0x468] sm:$0xff]  ;;  %v564_v37 = vld [vmem:[#allocation14 + $0x490] sm:$0xff] }
 0x21a   :  { %v273_v40 = vpop.xlane.xlu0 %272 }
 0x21b   :  { %v276_v41 = vmul.f32 0.03125, %v273_v40  ;;  %v463_v40 = vld [vmem:[#allocation14 + $0x168] sm:$0xff] }
 0x21d   :  { %v2287_v42 = vsub.f32 %v257_v33, %v276_v41  ;;  %v448_v33 = vld [vmem:[#allocation14 + $0xf0] sm:$0xff]  ;;  %v1516_v41 = vpack.c.bf16 %v463_v40, %v458_v39  ;;  %v558_v39 = vld [vmem:[#allocation14 + $0x460] sm:$0xff]  ;;  %v563_v40 = vld [vmem:[#allocation14 + $0x488] sm:$0xff] }
 0x21e   :  { %v275_v43 = vpop.xlane.xlu0 %274 }
 0x21f   :  { %v277_v44 = vmul.f32 0.03125, %v275_v43  ;;  %v280_v45 = vmul.f32 %v1233_v32, %v2287_v42  ;;  %v469_v43 = vld [vmem:[#allocation14 + $0x198] sm:$0xff] }
 0x221   :  { %v2290_v46 = vsub.f32 %v262_v34, %v277_v44  ;;  %v282_v47 = vmul.f32 %v280_v45, %v280_v45  ;;  %v453_v34 = vld [vmem:[#allocation14 + $0x118] sm:$0xff]  ;;  %v474_v44 = vld [vmem:[#allocation14 + $0x1c0] sm:$0xff] }
 0x222   :  { %v1512_v35 = vpack.c.bf16 %v453_v34, %v448_v33  ;;  %v1518_v45 = vpack.c.bf16 %v474_v44, %v469_v43  ;;  %v548_v33 = vld [vmem:[#allocation14 + $0x410] sm:$0xff]  ;;  %v553_v34 = vld [vmem:[#allocation14 + $0x438] sm:$0xff]  ;;  %v574_v44 = vld [vmem:[#allocation14 + $0x4e0] sm:$0xff] }
 0x223   :  { %284 = vadd.xlane.f32.xlu1 %v282_v47  ;;  %v281_v48 = vmul.f32 %v1233_v32, %v2290_v46  ;;  %v1510_v32 = vpack.c.bf16 %v454_v30, %v449_v29  ;;  %v468_v47 = vld [vmem:[#allocation14 + $0x190] sm:$0xff]  ;;  %v549_v29 = vld [vmem:[#allocation14 + $0x418] sm:$0xff]  ;;  %v554_v30 = vld [vmem:[#allocation14 + $0x440] sm:$0xff] }
 0x224   :  { %v569_v43 = vld [vmem:[#allocation14 + $0x4b8] sm:$0xff] }
 0x225   :  { %v283_v49 = vmul.f32 %v281_v48, %v281_v48  ;;  %1511 = vmatprep.subr.bf16.mxu0 %v1510_v32  ;;  %v473_v48 = vld [vmem:[#allocation14 + $0x1b8] sm:$0xff]  ;;  %v1550_v32 = vpack.c.bf16 %v554_v30, %v549_v29  ;;  %v476_v29 = vld [vmem:[#allocation14 + $0x1d0] sm:$0xff]  ;;  %v1612_v30 = vpack.c.bf16 %v465_v27, %v460_v25  ;;  %v571_v25 = vld [vmem:[#allocation14 + $0x4c8] sm:$0xff] }
 0x226   :  { %1513 = vmatpush1.bf16.msra.mxu0 %v1512_v35  ;;  %v1552_v35 = vpack.c.bf16 %v553_v34, %v548_v33  ;;  %v470_v33 = vld [vmem:[#allocation14 + $0x1a0] sm:$0xff]  ;;  %v475_v34 = vld [vmem:[#allocation14 + $0x1c8] sm:$0xff]  ;;  %v576_v27 = vld [vmem:[#allocation14 + $0x4f0] sm:$0xff] }
 0x227   :  { %286 = vadd.xlane.f32.xlu1 %v283_v49  ;;  %1515 = vmatprep.subr.bf16.mxu0 %v1514_v38  ;;  %v1520_v49 = vpack.c.bf16 %v473_v48, %v468_v47  ;;  %v1554_v38 = vpack.c.bf16 %v564_v37, %v559_v36  ;;  %v486_v36 = vld [vmem:[#allocation14 + $0x220] sm:$0xff]  ;;  %v1616_v37 = vpack.c.bf16 %v475_v34, %v470_v33 }
 0x228   :  { %v570_v33 = vld [vmem:[#allocation14 + $0x4c0] sm:$0xff] }
 0x22a   :  { %1517 = vmatpush1.bf16.msra.mxu0 %v1516_v41  ;;  %v1556_v41 = vpack.c.bf16 %v563_v40, %v558_v39  ;;  %v480_v39 = vld [vmem:[#allocation14 + $0x1f0] sm:$0xff]  ;;  %v485_v40 = vld [vmem:[#allocation14 + $0x218] sm:$0xff] }
 0x22b   :  { %1519 = vmatprep.subr.bf16.mxu0 %v1518_v45  ;;  %v1558_v45 = vpack.c.bf16 %v574_v44, %v569_v43  ;;  %v496_v43 = vld [vmem:[#allocation14 + $0x270] sm:$0xff]  ;;  %v1620_v44 = vpack.c.bf16 %v485_v40, %v480_v39  ;;  %v581_v40 = vld [vmem:[#allocation14 + $0x518] sm:$0xff] }
 0x22e   :  { %1521 = vmatpush1.bf16.msra.mxu0 %v1520_v49 }
 0x22f   :  { %1523 = vmatprep.subr.bf16.mxu0 %v1522_v52 }
 0x232   :  { %1525 = vmatpush1.bf16.msra.mxu0 %v1524_v55 }
 0x233   :  { %1527 = vmatprep.subr.bf16.mxu0 %v1526_v58 }
 0x236   :  { %1529 = vmatpush1.bf16.msra.mxu0 %v1528_v61 }
 0x237   :  { %1531 = vmatprep.subr.bf16.mxu0 %v1530_v0  ;;  %v425_v0 = vld [vmem:[#allocation14 + $0x38] sm:$0xff] }
 0x238   :  { %v1596_v5 = vpack.c.bf16 %v425_v0, %v420_v63 }
 0x23a   :  { %1533 = vmatpush1.bf16.msra.mxu0 %v1532_v3  ;;  %v431_v3 = vld [vmem:[#allocation14 + $0x68] sm:$0xff] }
 0x23b   :  { %1535 = vmatprep.subr.bf16.mxu0 %v1534_v6  ;;  %v1598_v6 = vpack.c.bf16 %v436_v4, %v431_v3  ;;  %v531_v3 = vld [vmem:[#allocation14 + $0x388] sm:$0xff]  ;;  %v536_v4 = vld [vmem:[#allocation14 + $0x3b0] sm:$0xff] }
 0x23e   :  { %1537 = vmatpush1.bf16.msra.mxu0 %v1536_v9 }
 0x23f   :  { %1539 = vmatprep.subr.bf16.mxu0 %v1538_v12  ;;  %v1602_v12 = vpack.c.bf16 %v446_v11, %v441_v10 }
 0x242   :  { %1541 = vmatpush1.bf16.msra.mxu0 %v1540_v15  ;;  %v451_v15 = vld [vmem:[#allocation14 + $0x108] sm:$0xff] }
 0x243   :  { %1543 = vmatprep.subr.bf16.mxu0 %v1542_v18  ;;  %v1606_v18 = vpack.c.bf16 %v456_v16, %v451_v15  ;;  %v1646_v16 = vpack.c.bf16 %v556_v14, %v551_v13  ;;  %v605_v13 = vld [vmem:[#allocation14 + $0x5d8] sm:$0xff] }
 0x244   :  { %v609_v14 = vld [vmem:[#allocation14 + $0x5f8] sm:$0xff] }
 0x246   :  { %1545 = vmatpush1.bf16.msra.mxu0 %v1544_v21  ;;  %v461_v21 = vld [vmem:[#allocation14 + $0x158] sm:$0xff] }
 0x247   :  { %1547 = vmatprep.subr.bf16.mxu0 %v1546_v24  ;;  %v1610_v24 = vpack.c.bf16 %v466_v22, %v461_v21  ;;  %v1650_v22 = vpack.c.bf16 %v566_v20, %v561_v19  ;;  %v608_v20 = vld [vmem:[#allocation14 + $0x5f0] sm:$0xff] }
 0x24a   :  { %1549 = vmatpush1.bf16.msra.mxu0 %v1548_v28  ;;  %v471_v28 = vld [vmem:[#allocation14 + $0x1a8] sm:$0xff] }
 0x24b   :  { %1551 = vmatprep.subr.bf16.mxu0 %v1550_v32  ;;  %v1614_v32 = vpack.c.bf16 %v476_v29, %v471_v28  ;;  %v1654_v29 = vpack.c.bf16 %v576_v27, %v571_v25  ;;  %v615_v25 = vld [vmem:[#allocation14 + $0x628] sm:$0xff] }
 0x24c   :  { %v619_v27 = vld [vmem:[#allocation14 + $0x648] sm:$0xff] }
 0x24e   :  { %1553 = vmatpush1.bf16.msra.mxu0 %v1552_v35  ;;  %v481_v35 = vld [vmem:[#allocation14 + $0x1f8] sm:$0xff] }
 0x24f   :  { %1555 = vmatprep.subr.bf16.mxu0 %v1554_v38  ;;  %v1618_v38 = vpack.c.bf16 %v486_v36, %v481_v35  ;;  %v575_v35 = vld [vmem:[#allocation14 + $0x4e8] sm:$0xff] }
 0x250   :  { %v1656_v36 = vpack.c.bf16 %v575_v35, %v570_v33  ;;  %v623_v35 = vld [vmem:[#allocation14 + $0x668] sm:$0xff] }
 0x252   :  { %1557 = vmatpush1.bf16.msra.mxu0 %v1556_v41  ;;  %v491_v41 = vld [vmem:[#allocation14 + $0x248] sm:$0xff] }
 0x253   :  { %1559 = vmatprep.subr.bf16.mxu0 %v1558_v45  ;;  %v1622_v45 = vpack.c.bf16 %v496_v43, %v491_v41  ;;  %v586_v41 = vld [vmem:[#allocation14 + $0x540] sm:$0xff] }
 0x254   :  { %v2301_v43 = vld [vmem:[#allocation5] sm:$0xff] }
 0x255   :  { %749 = vmatprep.mubr.f32.mxu0 %v2301_v43 }
 0x2b0   :  { %v285_v47 = vpop.xlane.xlu1 %284 }
 0x2b1   :  { %v288_v48 = vmul.f32 0.03125, %v285_v47  ;;  %v490_v47 = vld [vmem:[#allocation14 + $0x240] sm:$0xff] }
 0x2b3   :  { %v290_v49 = vadd.f32 1e-05, %v288_v48  ;;  %v495_v48 = vld [vmem:[#allocation14 + $0x268] sm:$0xff] }
 0x2b4   :  { %v287_v50 = vpop.xlane.xlu1 %286 }
 0x2b5   :  { %1785 = vrsqrt.f32 %v290_v49  ;;  %v289_v51 = vmul.f32 0.03125, %v287_v50  ;;  %v501_v49 = vld [vmem:[#allocation14 + $0x298] sm:$0xff]  ;;  %v506_v50 = vld [vmem:[#allocation14 + $0x2c0] sm:$0xff] }
 0x2b7   :  { %v291_v52 = vadd.f32 1e-05, %v289_v51  ;;  %v1624_v51 = vpack.c.bf16 %v495_v48, %v490_v47  ;;  %v583_v47 = vld [vmem:[#allocation14 + $0x528] sm:$0xff]  ;;  %v580_v48 = vld [vmem:[#allocation14 + $0x510] sm:$0xff] }
 0x2b9   :  { %1787 = vrsqrt.f32 %v291_v52  ;;  %v1626_v52 = vpack.c.bf16 %v506_v50, %v501_v49  ;;  %v585_v49 = vld [vmem:[#allocation14 + $0x538] sm:$0xff]  ;;  %v1236_v50 = vld [vmem:[%s2377_s10] ss:$0 sm:$0xff] }
 0x2bf   :  { %v1786_v53 = vpop.eup %1785 }
 0x2c0   :  { %v294_v55 = vmul.f32 %v1786_v53, %v2287_v42  ;;  %v500_v53 = vld [vmem:[#allocation14 + $0x290] sm:$0xff] }
 0x2c2   :  { %v303_v57 = vmul.f32 %v1234_v54, %v294_v55  ;;  %v511_v55 = vld [vmem:[#allocation14 + $0x2e8] sm:$0xff] }
 0x2c3   :  { %v1788_v58 = vpop.eup %1787 }
 0x2c4   :  { %v312_v59 = vadd.f32 %v1235_v56, %v303_v57  ;;  %v295_v60 = vmul.f32 %v1788_v58, %v2290_v46  ;;  %v1600_v46 = vpack.c.bf16 %v435_v8, %v430_v7  ;;  %v535_v7 = vld [vmem:[#allocation14 + $0x3a8] sm:$0xff]  ;;  %v541_v8 = vld [vmem:[#allocation14 + $0x3d8] sm:$0xff] }
 0x2c6   :  { %vm314_vm1 = vcmp.gt.f32.partialorder %v312_v59, 0.0  ;;  %v316_v61 = vmul.f32 0.01, %v312_v59  ;;  %v304_v62 = vmul.f32 %v1234_v54, %v295_v60  ;;  %v505_v54 = vld [vmem:[#allocation14 + $0x2b8] sm:$0xff]  ;;  %v515_v60 = vld [vmem:[#allocation14 + $0x308] sm:$0xff] }
 0x2c7   :  { %v1628_v57 = vpack.c.bf16 %v505_v54, %v500_v53  ;;  %v591_v54 = vld [vmem:[#allocation14 + $0x568] sm:$0xff] }
 0x2c8   :  { %v318_v1 = vsel %vm314_vm1, %v312_v59, %v316_v61  ;;  %v313_v2 = vadd.f32 %v1235_v56, %v304_v62  ;;  %v516_v56 = vld [vmem:[#allocation14 + $0x310] sm:$0xff]  ;;  %v510_v59 = vld [vmem:[#allocation14 + $0x2e0] sm:$0xff]  ;;  %v521_v61 = vld [vmem:[#allocation14 + $0x338] sm:$0xff] }
 0x2c9   :  { %1396 = vmatprep.mubr.f32.mxu1 %v318_v1  ;;  %v1630_v58 = vpack.c.bf16 %v516_v56, %v511_v55  ;;  %v526_v62 = vld [vmem:[#allocation14 + $0x360] sm:$0xff]  ;;  %v1632_v63 = vpack.c.bf16 %v515_v60, %v510_v59  ;;  %v520_v1 = vld [vmem:[#allocation14 + $0x330] sm:$0xff]  ;;  %v2308_v59 = vld [vmem:[#allocation5 + $0x8] sm:$0xff] }
 0x2ca   :  { %vm315_vm2 = vcmp.gt.f32.partialorder %v313_v2, 0.0  ;;  %v317_v42 = vmul.f32 0.01, %v313_v2  ;;  %v1634_v0 = vpack.c.bf16 %v526_v62, %v521_v61  ;;  %v596_v55 = vld [vmem:[#allocation14 + $0x590] sm:$0xff]  ;;  %v593_v61 = vld [vmem:[#allocation14 + $0x578] sm:$0xff] }
 0x2cb   :  { %v588_v60 = vld [vmem:[#allocation14 + $0x550] sm:$0xff] }
 0x2cc   :  { %v319_v9 = vsel %vm315_vm2, %v313_v2, %v317_v42  ;;  %v525_v2 = vld [vmem:[#allocation14 + $0x358] sm:$0xff] }
 0x2cd   :  { %1397 = vmatmul.mubr.f32.vlgmr.msra.gmra.mrb[0].mxu1 %v319_v9  ;;  %v1636_v42 = vpack.c.bf16 %v525_v2, %v520_v1  ;;  %v546_v9 = vld [vmem:[#allocation14 + $0x400] sm:$0xff]  ;;  %v595_v1 = vld [vmem:[#allocation14 + $0x588] sm:$0xff] }
 0x2ce   :  { %1597 = vmatpush1.bf16.msra.mxu1 %v1596_v5  ;;  %v1638_v5 = vpack.c.bf16 %v536_v4, %v531_v3  ;;  %v1642_v11 = vpack.c.bf16 %v546_v9, %v541_v8  ;;  %903 = vmatprep.mubr.f32.mxu1 %v2301_v43  ;;  %v599_v2 = vld [vmem:[#allocation14 + $0x5a8] sm:$0xff]  ;;  %v1662_v3 = vpack.c.bf16 %v596_v55, %v591_v54  ;;  %v604_v4 = vld [vmem:[#allocation14 + $0x5d0] sm:$0xff]  ;;  %v598_v8 = vld [vmem:[#allocation14 + $0x5a0] sm:$0xff] }
 0x2cf   :  { %1599 = vmatprep.subr.bf16.mxu1 %v1598_v6  ;;  %v530_v6 = vld [vmem:[#allocation14 + $0x380] sm:$0xff]  ;;  %v603_v9 = vld [vmem:[#allocation14 + $0x5c8] sm:$0xff] }
 0x2d0   :  { %v1640_v10 = vpack.c.bf16 %v535_v7, %v530_v6  ;;  %v1568_v6 = vpack.c.bf16 %v593_v61, %v588_v60  ;;  %v635_v54 = vld [vmem:[#allocation14 + $0x6c8] sm:$0xff] }
 0x2d1   :  { %v639_v55 = vld [vmem:[#allocation14 + $0x6e8] sm:$0xff] }
 0x2d2   :  { %1601 = vmatpush1.bf16.msra.mxu1 %v1600_v46  ;;  %v540_v46 = vld [vmem:[#allocation14 + $0x3d0] sm:$0xff] }
 0x2d3   :  { %1603 = vmatprep.subr.bf16.mxu1 %v1602_v12  ;;  %v545_v12 = vld [vmem:[#allocation14 + $0x3f8] sm:$0xff] }
 0x2d4   :  { %v1644_v15 = vpack.c.bf16 %v545_v12, %v540_v46  ;;  %v600_v12 = vld [vmem:[#allocation14 + $0x5b0] sm:$0xff] }
 0x2d5   :  { %v1668_v19 = vpack.c.bf16 %v605_v13, %v600_v12 }
 0x2d6   :  { %1605 = vmatpush1.bf16.msra.mxu1 %v1604_v17  ;;  %v550_v17 = vld [vmem:[#allocation14 + $0x420] sm:$0xff] }
 0x2d7   :  { %1607 = vmatprep.subr.bf16.mxu1 %v1606_v18  ;;  %v555_v18 = vld [vmem:[#allocation14 + $0x448] sm:$0xff] }
 0x2d8   :  { %v1648_v21 = vpack.c.bf16 %v555_v18, %v550_v17  ;;  %v616_v17 = vld [vmem:[#allocation14 + $0x630] sm:$0xff]  ;;  %v1572_v18 = vpack.c.bf16 %v603_v9, %v598_v8 }
 0x2da   :  { %1609 = vmatpush1.bf16.msra.mxu1 %v1608_v23  ;;  %v560_v23 = vld [vmem:[#allocation14 + $0x470] sm:$0xff] }
 0x2db   :  { %1611 = vmatprep.subr.bf16.mxu1 %v1610_v24  ;;  %v565_v24 = vld [vmem:[#allocation14 + $0x498] sm:$0xff] }
 0x2dc   :  { %v1652_v28 = vpack.c.bf16 %v565_v24, %v560_v23  ;;  %v610_v24 = vld [vmem:[#allocation14 + $0x600] sm:$0xff] }
 0x2dd   :  { %v1672_v33 = vpack.c.bf16 %v615_v25, %v610_v24  ;;  %v427_v24 = vld [vmem:[#allocation14 + $0x48] sm:$0xff] }
 0x2de   :  { %1613 = vmatpush1.bf16.msra.mxu1 %v1612_v30  ;;  %v568_v30 = vld [vmem:[#allocation14 + $0x4b0] sm:$0xff] }
 0x2df   :  { %1615 = vmatprep.subr.bf16.mxu1 %v1614_v32  ;;  %v573_v32 = vld [vmem:[#allocation14 + $0x4d8] sm:$0xff] }
 0x2e0   :  { %v1560_v34 = vpack.c.bf16 %v573_v32, %v568_v30  ;;  %v626_v30 = vld [vmem:[#allocation14 + $0x680] sm:$0xff] }
 0x2e2   :  { %1617 = vmatpush1.bf16.msra.mxu1 %v1616_v37  ;;  %1561 = vmatpush1.bf16.msra.mxu0 %v1560_v34  ;;  %v579_v37 = vld [vmem:[#allocation14 + $0x508] sm:$0xff]  ;;  %v618_v34 = vld [vmem:[#allocation14 + $0x640] sm:$0xff] }
 0x2e3   :  { %1619 = vmatprep.subr.bf16.mxu1 %v1618_v38  ;;  %v584_v38 = vld [vmem:[#allocation14 + $0x530] sm:$0xff] }
 0x2e4   :  { %v1562_v39 = vpack.c.bf16 %v584_v38, %v579_v37  ;;  %v620_v38 = vld [vmem:[#allocation14 + $0x650] sm:$0xff] }
 0x2e6   :  { %1621 = vmatpush1.bf16.msra.mxu1 %v1620_v44  ;;  %v1658_v44 = vpack.c.bf16 %v586_v41, %v581_v40  ;;  %1563 = vmatprep.subr.bf16.mxu0 %v1562_v39  ;;  %v625_v39 = vld [vmem:[#allocation14 + $0x678] sm:$0xff]  ;;  %v634_v41 = vld [vmem:[#allocation14 + $0x6c0] sm:$0xff] }
 0x2e7   :  { %1623 = vmatprep.subr.bf16.mxu1 %v1622_v45  ;;  %v578_v45 = vld [vmem:[#allocation14 + $0x500] sm:$0xff]  ;;  %v629_v40 = vld [vmem:[#allocation14 + $0x698] sm:$0xff] }
 0x2ea   :  { %1625 = vmatpush1.bf16.msra.mxu1 %v1624_v51  ;;  %v589_v51 = vld [vmem:[#allocation14 + $0x558] sm:$0xff] }
 0x2eb   :  { %1627 = vmatprep.subr.bf16.mxu1 %v1626_v52  ;;  %v594_v52 = vld [vmem:[#allocation14 + $0x580] sm:$0xff] }
 0x2ee   :  { %1629 = vmatpush1.bf16.msra.mxu1 %v1628_v57  ;;  %v1564_v57 = vpack.c.bf16 %v583_v47, %v578_v45  ;;  %v636_v45 = vld [vmem:[#allocation14 + $0x6d0] sm:$0xff]  ;;  %v1580_v47 = vpack.c.bf16 %v623_v35, %v618_v34  ;;  %v437_v34 = vld [vmem:[#allocation14 + $0x98] sm:$0xff] }
 0x2ef   :  { %1631 = vmatprep.subr.bf16.mxu1 %v1630_v58  ;;  %v1660_v58 = vpack.c.bf16 %v585_v49, %v580_v48  ;;  %v1676_v48 = vpack.c.bf16 %v625_v39, %v620_v38  ;;  %v628_v49 = vld [vmem:[#allocation14 + $0x690] sm:$0xff]  ;;  %v527_v38 = vld [vmem:[#allocation14 + $0x368] sm:$0xff] }
 0x2f0   :  { %v592_v35 = vld [vmem:[#allocation14 + $0x570] sm:$0xff]  ;;  %v2323_v39 = vld [vmem:[#allocation8 + $0x8] sm:$0xff] }
 0x2f2   :  { %1633 = vmatpush1.bf16.msra.mxu1 %v1632_v63  ;;  %v1566_v63 = vpack.c.bf16 %v594_v52, %v589_v51  ;;  %v1582_v51 = vpack.c.bf16 %v634_v41, %v629_v40 }
 0x2f3   :  { %1635 = vmatprep.subr.bf16.mxu1 %v1634_v0  ;;  %v590_v0 = vld [vmem:[#allocation14 + $0x560] sm:$0xff] }
 0x2f4   :  { %v1664_v7 = vpack.c.bf16 %v595_v1, %v590_v0  ;;  %v643_v0 = vld [vmem:[#allocation14 + $0x708] sm:$0xff] }
 0x2f6   :  { %1637 = vmatpush1.bf16.msra.mxu1 %v1636_v42  ;;  %v601_v42 = vld [vmem:[#allocation14 + $0x5b8] sm:$0xff] }
 0x2f7   :  { %1639 = vmatprep.subr.bf16.mxu1 %v1638_v5  ;;  %v606_v5 = vld [vmem:[#allocation14 + $0x5e0] sm:$0xff] }
 0x2f8   :  { %v1666_v46 = vpack.c.bf16 %v606_v5, %v601_v42  ;;  %v649_v42 = vld [vmem:[#allocation14 + $0x738] sm:$0xff]  ;;  %v654_v5 = vld [vmem:[#allocation14 + $0x760] sm:$0xff] }
 0x2f9   :  { %v1590_v12 = vpack.c.bf16 %v654_v5, %v649_v42  ;;  %v552_v42 = vld [vmem:[#allocation14 + $0x430] sm:$0xff]  ;;  %v557_v5 = vld [vmem:[#allocation14 + $0x458] sm:$0xff] }
 0x2fa   :  { %1641 = vmatpush1.bf16.msra.mxu1 %v1640_v10 }
 0x2fb   :  { %1643 = vmatprep.subr.bf16.mxu1 %v1642_v11  ;;  %v1570_v11 = vpack.c.bf16 %v604_v4, %v599_v2  ;;  %v645_v4 = vld [vmem:[#allocation14 + $0x718] sm:$0xff] }
 0x2fe   :  { %1645 = vmatpush1.bf16.msra.mxu1 %v1644_v15  ;;  %v614_v15 = vld [vmem:[#allocation14 + $0x620] sm:$0xff] }
 0x2ff   :  { %1647 = vmatprep.subr.bf16.mxu1 %v1646_v16  ;;  %v611_v16 = vld [vmem:[#allocation14 + $0x608] sm:$0xff] }
 0x300   :  { %v1670_v23 = vpack.c.bf16 %v616_v17, %v611_v16  ;;  %v502_v16 = vld [vmem:[#allocation14 + $0x2a0] sm:$0xff]  ;;  %v507_v17 = vld [vmem:[#allocation14 + $0x2c8] sm:$0xff] }
 0x302   :  { %1649 = vmatpush1.bf16.msra.mxu1 %v1648_v21  ;;  %v613_v21 = vld [vmem:[#allocation14 + $0x618] sm:$0xff] }
 0x303   :  { %1651 = vmatprep.subr.bf16.mxu1 %v1650_v22  ;;  %v1574_v22 = vpack.c.bf16 %v614_v15, %v609_v14  ;;  %v1576_v32 = vpack.c.bf16 %v613_v21, %v608_v20  ;;  %v650_v14 = vld [vmem:[#allocation14 + $0x740] sm:$0xff]  ;;  %v655_v15 = vld [vmem:[#allocation14 + $0x768] sm:$0xff] }
 0x304   :  { %v1688_v21 = vpack.c.bf16 %v655_v15, %v650_v14 }
 0x306   :  { %1653 = vmatpush1.bf16.msra.mxu1 %v1652_v28  ;;  %v624_v28 = vld [vmem:[#allocation14 + $0x670] sm:$0xff] }
 0x307   :  { %1655 = vmatprep.subr.bf16.mxu1 %v1654_v29  ;;  %v621_v29 = vld [vmem:[#allocation14 + $0x658] sm:$0xff] }
 0x308   :  { %v1674_v37 = vpack.c.bf16 %v626_v30, %v621_v29  ;;  %v163_v29 = vld [vmem:[#allocation8] sm:$0xff] }
 0x30a   :  { %1657 = vmatpush1.bf16.msra.mxu1 %v1656_v36  ;;  %v1578_v36 = vpack.c.bf16 %v624_v28, %v619_v27  ;;  %v512_v27 = vld [vmem:[#allocation14 + $0x2f0] sm:$0xff]  ;;  %v517_v28 = vld [vmem:[#allocation14 + $0x318] sm:$0xff] }
 0x30b   :  { %1659 = vmatprep.subr.bf16.mxu1 %v1658_v44  ;;  %v631_v44 = vld [vmem:[#allocation14 + $0x6a8] sm:$0xff] }
 0x30c   :  { %v1678_v52 = vpack.c.bf16 %v636_v45, %v631_v44  ;;  %v602_v44 = vld [vmem:[#allocation14 + $0x5c0] sm:$0xff]  ;;  %v607_v45 = vld [vmem:[#allocation14 + $0x5e8] sm:$0xff] }
 0x3a0   :  { %v1398_v53 = vpop.f32.mrb[0].mxu1 }
 0x3a1   :  { %v409_v56 = vpop.f32.mrb[1].mxu1  ;;  %v2314_v10 = vadd.f32 %v1398_v53, %v1236_v50  ;;  %v630_v53 = vld [vmem:[#allocation14 + $0x6a0] sm:$0xff] }
 0x3a2   :  { %v2310_v62 = vadd.f32 %v1236_v50, %v409_v56  ;;  %v633_v50 = vld [vmem:[#allocation14 + $0x6b8] sm:$0xff]  ;;  %v644_v56 = vld [vmem:[#allocation14 + $0x710] sm:$0xff]  ;;  %v1680_v61 = vpack.c.bf16 %v635_v54, %v630_v53 }
 0x3a3   :  { %v1584_v60 = vpack.c.bf16 %v633_v50, %v628_v49  ;;  %v1586_v1 = vpack.c.bf16 %v644_v56, %v639_v55  ;;  %v447_v49 = vld [vmem:[#allocation14 + $0xe8] sm:$0xff]  ;;  %v532_v50 = vld [vmem:[#allocation14 + $0x390] sm:$0xff]  ;;  %v617_v55 = vld [vmem:[#allocation14 + $0x638] sm:$0xff] }
 0x3a4   :  { %750 = vmatmul.mubr.f32.vlgmr.msra.gmra.mrb[2].mxu0 %v2310_v62  ;;  %904 = vmatmul.mubr.f32.vlgmr.msra.gmra.mrb[2].mxu1 %v2310_v62  ;;  %v612_v54 = vld [vmem:[#allocation14 + $0x610] sm:$0xff] }
 0x3a5   :  { %1565 = vmatpush1.bf16.msra.mxu0 %v1564_v57  ;;  %1661 = vmatpush1.bf16.msra.mxu1 %v1660_v58  ;;  %v641_v57 = vld [vmem:[#allocation14 + $0x6f8] sm:$0xff]  ;;  %v646_v58 = vld [vmem:[#allocation14 + $0x720] sm:$0xff] }
 0x3a6   :  { %755 = vmatprep.mubr.f32.mxu0 %v2308_v59  ;;  %1567 = vmatprep.subr.bf16.mxu0 %v1566_v63  ;;  %v638_v63 = vld [vmem:[#allocation14 + $0x6e0] sm:$0xff]  ;;  %v1682_v2 = vpack.c.bf16 %v646_v58, %v641_v57  ;;  %v457_v57 = vld [vmem:[#allocation14 + $0x138] sm:$0xff] }
 0x3a7   :  { %909 = vmatprep.mubr.f32.mxu1 %v2308_v59  ;;  %1663 = vmatprep.subr.bf16.mxu1 %v1662_v3  ;;  %v640_v3 = vld [vmem:[#allocation14 + $0x6f0] sm:$0xff]  ;;  %v1588_v8 = vpack.c.bf16 %v643_v0, %v638_v63  ;;  %v542_v58 = vld [vmem:[#allocation14 + $0x3e0] sm:$0xff] }
 0x3a8   :  { %756 = vmatmul.mubr.f32.gmra.mrb[4].mxu0 %v2314_v10  ;;  %910 = vmatmul.mubr.f32.gmra.mrb[4].mxu1 %v2314_v10  ;;  %v1684_v9 = vpack.c.bf16 %v645_v4, %v640_v3  ;;  %v622_v0 = vld [vmem:[#allocation14 + $0x660] sm:$0xff]  ;;  %v467_v4 = vld [vmem:[#allocation14 + $0x188] sm:$0xff] }
 0x3a9   :  { %1569 = vmatpush1.bf16.msra.mxu0 %v1568_v6  ;;  %1665 = vmatpush1.bf16.msra.mxu1 %v1664_v7  ;;  %v651_v6 = vld [vmem:[#allocation14 + $0x748] sm:$0xff]  ;;  %v656_v7 = vld [vmem:[#allocation14 + $0x770] sm:$0xff]  ;;  %v462_v3 = vld [vmem:[#allocation14 + $0x160] sm:$0xff] }
 0x3aa   :  { %1571 = vmatprep.subr.bf16.mxu0 %v1570_v11  ;;  %1667 = vmatprep.subr.bf16.mxu1 %v1666_v46  ;;  %v648_v11 = vld [vmem:[#allocation14 + $0x730] sm:$0xff]  ;;  %v653_v46 = vld [vmem:[#allocation14 + $0x758] sm:$0xff]  ;;  %v1686_v13 = vpack.c.bf16 %v656_v7, %v651_v6 }
 0x3ab   :  { %826 = vmatprep.mubr.f32.mxu0 %v2059_v31  ;;  %980 = vmatprep.mubr.f32.mxu1 %v2059_v31  ;;  %v1592_v20 = vpack.c.bf16 %v653_v46, %v648_v11  ;;  %v632_v7 = vld [vmem:[#allocation14 + $0x6b0] sm:$0xff]  ;;  %v477_v46 = vld [vmem:[#allocation14 + $0x1d8] sm:$0xff] }
 0x3ac   :  { %v472_v11 = vld [vmem:[#allocation14 + $0x1b0] sm:$0xff] }
 0x3ad   :  { %1573 = vmatpush1.bf16.msra.mxu0 %v1572_v18  ;;  %1669 = vmatpush1.bf16.msra.mxu1 %v1668_v19  ;;  %v582_v18 = vld [vmem:[#allocation14 + $0x520] sm:$0xff]  ;;  %v587_v19 = vld [vmem:[#allocation14 + $0x548] sm:$0xff]  ;;  %v1712_v15 = vpack.c.bf16 %v477_v46, %v472_v11 }
 0x3ae   :  { %1575 = vmatprep.subr.bf16.mxu0 %v1574_v22  ;;  %1671 = vmatprep.subr.bf16.mxu1 %v1670_v23  ;;  %v1690_v22 = vpack.c.bf16 %v507_v17, %v502_v16  ;;  %v422_v23 = vld [vmem:[#allocation14 + $0x20] sm:$0xff]  ;;  %v1722_v25 = vpack.c.bf16 %v587_v19, %v582_v18  ;;  %v647_v17 = vld [vmem:[#allocation14 + $0x728] sm:$0xff] }
 0x3af   :  { %v1692_v30 = vpack.c.bf16 %v427_v24, %v422_v23  ;;  %v642_v16 = vld [vmem:[#allocation14 + $0x700] sm:$0xff] }
 0x3b0   :  { %v482_v19 = vld [vmem:[#allocation14 + $0x200] sm:$0xff]  ;;  %v1746_v23 = vpack.c.bf16 %v647_v17, %v642_v16 }
 0x3b1   :  { %1577 = vmatpush1.bf16.msra.mxu0 %v1576_v32  ;;  %1673 = vmatpush1.bf16.msra.mxu1 %v1672_v33  ;;  %v432_v32 = vld [vmem:[#allocation14 + $0x70] sm:$0xff]  ;;  %v1694_v33 = vpack.c.bf16 %v517_v28, %v512_v27  ;;  %v657_v27 = vld [vmem:[#allocation14 + $0x778] sm:$0xff] }
 0x3b2   :  { %1579 = vmatprep.subr.bf16.mxu0 %v1578_v36  ;;  %1675 = vmatprep.subr.bf16.mxu1 %v1674_v37  ;;  %v597_v36 = vld [vmem:[#allocation14 + $0x598] sm:$0xff]  ;;  %v522_v37 = vld [vmem:[#allocation14 + $0x340] sm:$0xff]  ;;  %v1696_v40 = vpack.c.bf16 %v437_v34, %v432_v32  ;;  %v661_v34 = vshrl.u32 %v265_v26, 7 }
 0x3b3   :  { %v1726_v41 = vpack.c.bf16 %v597_v36, %v592_v35 }
 0x3b4   :  { %v662_v35 = vsub.s32 0, %v661_v34  ;;  %v670_v36 = vsub.s32 2, %v661_v34 }
 0x3b5   :  { %1581 = vmatpush1.bf16.msra.mxu0 %v1580_v47  ;;  %1677 = vmatpush1.bf16.msra.mxu1 %v1676_v48  ;;  %v1698_v47 = vpack.c.bf16 %v527_v38, %v522_v37  ;;  %v442_v48 = vld [vmem:[#allocation14 + $0xc0] sm:$0xff]  ;;  %v658_v37 = vld [vmem:[%s2379_s12] sm:$0x1f]  ;;  %v666_v38 = vsub.s32 1, %v661_v34  ;;  %s2060_s12 = smov [#allocation17]  }
 0x3b6   :  { %1583 = vmatprep.subr.bf16.mxu0 %v1582_v51  ;;  %1679 = vmatprep.subr.bf16.mxu1 %v1678_v52  ;;  %v537_v51 = vld [vmem:[#allocation14 + $0x3b8] sm:$0xff]  ;;  %v1730_v52 = vpack.c.bf16 %v607_v45, %v602_v44  ;;  %v1700_v53 = vpack.c.bf16 %v447_v49, %v442_v48  ;;  %v671_v44 = vrot.slane %v658_v37, %v670_v36  ;;  %s1212_s5 = sshll.u32 %s2060_s12, 4  ;;  %s1213_s5 = int_to_ptr.vmem [resolvable:$true] %s1212_s5 }
 0x3b7   :  { %v1702_v56 = vpack.c.bf16 %v537_v51, %v532_v50  ;;  %v667_v45 = vrot.slane %v658_v37, %v666_v38  ;;  %s1989_s4 = scalar_lea.vmem %s1213_s5, 256  ;;  %p1994_p9 = scmp.lt.s32.totalorder %s1213_s5, %s1213_s5 }
 0x3b8   :  { %p1990_p8 = scmp.ne.s32.totalorder %s1213_s5, %s1989_s4  ;;  %p1995_p10 = scmp.lt.s32.totalorder %s1989_s4, %s1989_s4 }
 0x3b9   :  { %1585 = vmatpush1.bf16.msra.mxu0 %v1584_v60  ;;  %1681 = vmatpush1.bf16.msra.mxu1 %v1680_v61  ;;  %v547_v60 = vld [vmem:[#allocation14 + $0x408] sm:$0xff]  ;;  %v1734_v61 = vpack.c.bf16 %v617_v55, %v612_v54 }
 0x3ba   :  { %1587 = vmatprep.subr.bf16.mxu0 %v1586_v1  ;;  %1683 = vmatprep.subr.bf16.mxu1 %v1682_v2  ;;  %v627_v1 = vld [vmem:[#allocation14 + $0x688] sm:$0xff]  ;;  %v1706_v2 = vpack.c.bf16 %v547_v60, %v542_v58  ;;  %p1996_p11 = por %p1995_p10, %p1994_p9 }
 0x3bb   :  { %v1738_v6 = vpack.c.bf16 %v627_v1, %v622_v0 }
 0x3bc   :  { %p1997_p12 = pnand %p1996_p11, %p1990_p8 }
 0x3bd   :  { %1589 = vmatpush1.bf16.msra.mxu0 %v1588_v8  ;;  %1685 = vmatpush1.bf16.msra.mxu1 %v1684_v9  ;;  %v637_v8 = vld [vmem:[#allocation14 + $0x6d8] sm:$0xff]  ;;  %v1710_v9 = vpack.c.bf16 %v557_v5, %v552_v42 }
 0x3be   :  { %1591 = vmatprep.subr.bf16.mxu0 %v1590_v12  ;;  %1687 = vmatprep.subr.bf16.mxu1 %v1686_v13  ;;  %v562_v12 = vld [vmem:[#allocation14 + $0x480] sm:$0xff]  ;;  %v567_v13 = vld [vmem:[#allocation14 + $0x4a8] sm:$0xff]  ;;  %v1742_v14 = vpack.c.bf16 %v637_v8, %v632_v7 }
 0x3bf   :  { %v1714_v18 = vpack.c.bf16 %v567_v13, %v562_v12 }
 0x3c1   :  { %1593 = vmatpush1.bf16.msra.mxu0 %v1592_v20  ;;  %1689 = vmatpush1.bf16.msra.mxu1 %v1688_v21  ;;  %v487_v20 = vld [vmem:[#allocation14 + $0x228] sm:$0xff]  ;;  %v572_v21 = vld [vmem:[#allocation14 + $0x4d0] sm:$0xff] }
 0x3c2   :  { %1691 = vmatprep.subr.bf16.mxu0 %v1690_v22  ;;  %1723 = vmatprep.subr.bf16.mxu1 %v1722_v25  ;;  %v577_v22 = vld [vmem:[#allocation14 + $0x4f8] sm:$0xff]  ;;  %v1716_v24 = vpack.c.bf16 %v487_v20, %v482_v19 }
 0x3c3   :  { %v1718_v28 = vpack.c.bf16 %v577_v22, %v572_v21 }
 0x3c4   :  { %827 = vmatmul.mubr.f32.vlgmr.msra.gmra.mrb[2].mxu0 %v163_v29  ;;  %981 = vmatmul.mubr.f32.vlgmr.msra.gmra.mrb[2].mxu1 %v163_v29 }
 0x3c5   :  { %1693 = vmatpush3.bf16.msra.mxu0 %v1692_v30  ;;  %832 = vmatprep.mubr.f32.mxu0 %v2059_v31  ;;  %v497_v30 = vld [vmem:[#allocation14 + $0x278] sm:$0xff] }
 0x3c6   :  { %986 = vmatprep.mubr.f32.mxu1 %v2059_v31  ;;  %1695 = vmatprep.subr.bf16.mxu0 %v1694_v33  ;;  %v452_v31 = vld [vmem:[#allocation14 + $0x110] sm:$0xff] }
 0x3c7   :  { %1725 = vmatpush3.bf16.msra.mxu1 %v1722_v25  ;;  %v1704_v63 = vpack.c.bf16 %v457_v57, %v452_v31  ;;  %v652_v25 = vld [vmem:[#allocation14 + $0x750] sm:$0xff] }
 0x3c8   :  { %833 = vmatmul.mubr.f32.gmra.mrb[4].mxu0 %v2323_v39  ;;  %987 = vmatmul.mubr.f32.gmra.mrb[4].mxu1 %v2323_v39  ;;  %v1750_v32 = vpack.c.bf16 %v657_v27, %v652_v25  ;;  %v161_v27 = vld [vmem:[#allocation7] sm:$0xff] }
 0x3c9   :  { %1697 = vmatpush3.bf16.msra.mxu0 %v1696_v40  ;;  %1727 = vmatprep.subr.bf16.mxu1 %v1726_v41  ;;  %v674_v40 = vsub.s32 3, %v661_v34 }
 0x3ca   :  { %1699 = vmatprep.subr.bf16.mxu0 %v1698_v47  ;;  %1057 = vmatprep.mubr.f32.mxu0 %v2301_v43  ;;  %v1708_v43 = vpack.c.bf16 %v467_v4, %v462_v3 }
 0x3cb   :  { %1729 = vmatpush3.bf16.msra.mxu1 %v1726_v41  ;;  %1431 = vmatprep.mubr.f32.mxu1 %v163_v29  ;;  %v492_v29 = vld [vmem:[#allocation14 + $0x250] sm:$0xff]  ;;  %v663_v41 = vrot.slane %v658_v37, %v662_v35 }
 0x3cc   :  { %1731 = vmatprep.subr.bf16.mxu1 %v1730_v52  ;;  %v1720_v33 = vpack.c.bf16 %v497_v30, %v492_v29  ;;  %v165_v35 = vld [vmem:[#allocation10] sm:$0xff] }
 0x3cd   :  { %1701 = vmatpush3.bf16.msra.mxu0 %v1700_v53 }
 0x3ce   :  { %1703 = vmatprep.subr.bf16.mxu0 %v1702_v56 }
 0x3cf   :  { %1733 = vmatpush3.bf16.msra.mxu1 %v1730_v52 }
 0x3d0   :  { %1735 = vmatprep.subr.bf16.mxu1 %v1734_v61 }
 0x3d1   :  { %1705 = vmatpush3.bf16.msra.mxu0 %v1704_v63  ;;  %v678_v63 = vsub.s32 4, %v661_v34 }
 0x3d2   :  { %1707 = vmatprep.subr.bf16.mxu0 %v1706_v2 }
 0x3d3   :  { %1737 = vmatpush3.bf16.msra.mxu1 %v1734_v61  ;;  %v679_v4 = vrot.slane %v658_v37, %v678_v63 }
 0x3d4   :  { %1739 = vmatprep.subr.bf16.mxu1 %v1738_v6 }
 0x3d5   :  { %1709 = vmatpush3.bf16.msra.mxu0 %v1708_v43 }
 0x3d6   :  { %1711 = vmatprep.subr.bf16.mxu0 %v1710_v9 }
 0x3d7   :  { %1741 = vmatpush3.bf16.msra.mxu1 %v1738_v6 }
 0x3d8   :  { %1743 = vmatprep.subr.bf16.mxu1 %v1742_v14 }
 0x3d9   :  { %1713 = vmatpush3.bf16.msra.mxu0 %v1712_v15 }
 0x3da   :  { %1715 = vmatprep.subr.bf16.mxu0 %v1714_v18 }
 0x3db   :  { %1745 = vmatpush3.bf16.msra.mxu1 %v1742_v14 }
 0x3dc   :  { %1747 = vmatprep.subr.bf16.mxu1 %v1746_v23 }
 0x3dd   :  { %1717 = vmatpush3.bf16.msra.mxu0 %v1716_v24 }
 0x3de   :  { %1719 = vmatprep.subr.bf16.mxu0 %v1718_v28 }
 0x3df   :  { %1749 = vmatpush3.bf16.msra.mxu1 %v1746_v23 }
 0x3e0   :  { %1751 = vmatprep.subr.bf16.mxu1 %v1750_v32 }
 0x3e1   :  { %1721 = vmatpush3.bf16.msra.mxu0 %v1720_v33 }
 0x3e3   :  { %1753 = vmatpush3.bf16.msra.mxu1 %v1750_v32 }
 0x3e4   :  { %1058 = vmatmul.mubr.f32.vlgmr.msra.gmra.mrb[6].mxu0 %v2310_v62  ;;  %v675_v62 = vrot.slane %v658_v37, %v674_v40  ;;  %v162_v40 = vld [vmem:[#allocation7 + $0x8] sm:$0xff] }
 0x3e5   :  { %1062 = vmatprep.mubr.f32.mxu0 %v2308_v59 }
 0x3e6   :  { %1432 = vmatmul.mubr.f32.vlgmr.msra.gmra.mrb[6].mxu1 %v2323_v39 }
 0x3e8   :  { %1063 = vmatmul.mubr.f32.gmra.mrb[8].mxu0 %v2314_v10 }
 0x497   :  { %v828_v47 = vpop.f32.mrb[2].mxu0  ;;  %v982_v59 = vpop.f32.mrb[2].mxu1 }
 0x498   :  { %v1754_v48 = vadd.f32 %v828_v47, %v663_v41  ;;  %v1758_v39 = vadd.f32 %v982_v59, %v671_v44  ;;  %v830_v49 = vpop.f32.mrb[3].mxu0  ;;  %v984_v10 = vpop.f32.mrb[3].mxu1  ;;  %v166_v59 = vld [vmem:[#allocation10 + $0x8] sm:$0xff] }
 0x499   :  { %v1755_v50 = vadd.f32 %v830_v49, %v667_v45  ;;  %v1759_v26 = vadd.f32 %v984_v10, %v675_v62 }
 0x49a   :  { %v1143_v60 = vmul.f32 0.5, %v1754_v48  ;;  %v1159_v61 = vmul.f32 0.5, %v1758_v39 }
 0x49b   :  { %v834_v51 = vpop.f32.mrb[4].mxu0  ;;  %v988_v52 = vpop.f32.mrb[4].mxu1  ;;  %v1151_v58 = vmul.f32 0.5, %v1755_v50  ;;  %v1167_v19 = vmul.f32 0.5, %v1759_v26 }
 0x49c   :  { %v1756_v53 = vadd.f32 %v834_v51, %v663_v41  ;;  %v1760_v54 = vadd.f32 %v988_v52, %v671_v44  ;;  %v836_v55 = vpop.f32.mrb[5].mxu0  ;;  %v990_v56 = vpop.f32.mrb[5].mxu1 }
 0x49d   :  { %v1757_v31 = vadd.f32 %v836_v55, %v667_v45  ;;  %v1761_v57 = vadd.f32 %v990_v56, %v675_v62  ;;  %1789 = vtanh.f32 %v1151_v58 }
 0x49e   :  { %1791 = vtanh.f32 %v1143_v60  ;;  %v1144_v1 = vmul.f32 0.5, %v1756_v53  ;;  %v1160_v2 = vmul.f32 0.5, %v1760_v54 }
 0x49f   :  { %v1152_v0 = vmul.f32 0.5, %v1757_v31  ;;  %1793 = vtanh.f32 %v1159_v61  ;;  %v1168_v28 = vmul.f32 0.5, %v1761_v57 }
 0x4a1   :  { %1795 = vtanh.f32 %v1152_v0 }
 0x4a2   :  { %1797 = vtanh.f32 %v1144_v1 }
 0x4a3   :  { %1799 = vtanh.f32 %v1160_v2 }
 0x4a7   :  { %v1790_v12 = vpop.eup %1789 }
 0x4a8   :  { %v1792_v14 = vpop.eup %1791  ;;  %v1155_v17 = vadd.f32 1.0, %v1790_v12 }
 0x4a9   :  { %v1794_v15 = vpop.eup %1793  ;;  %v1147_v21 = vadd.f32 1.0, %v1792_v14 }
 0x4aa   :  { %v1163_v22 = vadd.f32 1.0, %v1794_v15  ;;  %v1157_v24 = vmul.f32 0.5, %v1155_v17 }
 0x4ab   :  { %v1796_v18 = vpop.eup %1795  ;;  %v1149_v29 = vmul.f32 0.5, %v1147_v21 }
 0x4ac   :  { %v1798_v20 = vpop.eup %1797  ;;  %v1156_v25 = vadd.f32 1.0, %v1796_v18  ;;  %v1165_v30 = vmul.f32 0.5, %v1163_v22  ;;  %v1179_v36 = vmul.f32 %v1157_v24, %v161_v27 }
 0x4ad   :  { %v1800_v23 = vpop.eup %1799  ;;  %v1148_v32 = vadd.f32 1.0, %v1798_v20 }
 0x4ae   :  { %v1164_v33 = vadd.f32 1.0, %v1800_v23  ;;  %v1158_v37 = vmul.f32 0.5, %v1156_v25  ;;  %v1183_v41 = vmul.f32 %v1165_v30, %v165_v35 }
 0x4af   :  { %v1150_v44 = vmul.f32 0.5, %v1148_v32 }
 0x4b0   :  { %v1166_v45 = vmul.f32 0.5, %v1164_v33  ;;  %v1180_v48 = vmul.f32 %v1158_v37, %v162_v40 }
 0x4b2   :  { %v1184_v10 = vmul.f32 %v1166_v45, %v166_v59 }
 0x4b7   :  { %v1305_v3 = vpop.f32.mrb[6].mxu0 }
 0x4b8   :  { %v1306_v42 = vpop.f32.mrb[7].mxu0 }
 0x4b9   :  { %v1307_v5 = vadd.f32 %v1306_v42, %v1305_v3  ;;  %v1433_v6 = vpop.f32.mrb[6].mxu1 }
 0x4ba   :  { %v1134_v43 = vpop.f32.mrb[7].mxu1 }
 0x4bb   :  { %v1308_v7 = vpop.f32.mrb[8].mxu0  ;;  %v1060_v8 = vadd.f32 %v1307_v5, %v679_v4 }
 0x4bc   :  { %v1309_v9 = vpop.f32.mrb[9].mxu0 }
 0x4bd   :  { %v1310_v11 = vadd.f32 %v1309_v9, %v1308_v7  ;;  %v1135_v46 = vadd.f32 %v1134_v43, %v1060_v8 }
 0x4bf   :  { %v1065_v13 = vadd.f32 %v1310_v11, %v679_v4  ;;  %1801 = vtanh.f32 %v1135_v46 }
 0x4c1   :  { %v1140_v16 = vadd.f32 %v1433_v6, %v1065_v13 }
 0x4c3   :  { %1803 = vtanh.f32 %v1140_v16 }
 0x4c4   :  { %1805 = vtanh.f32 %v1167_v19 }
 0x4c5   :  { %1807 = vtanh.f32 %v1168_v28 }
 0x4c9   :  { %v1802_v34 = vpop.eup %1801 }
 0x4ca   :  { %v1177_v38 = vmul.f32 %v1802_v34, %v1149_v29 }
 0x4cc   :  { %v1181_v62 = vadd.f32 %v1179_v36, %v1177_v38 }
 0x4cd   :  { %v1804_v47 = vpop.eup %1803 }
 0x4ce   :  { %v1178_v39 = vmul.f32 %v1804_v47, %v1150_v44  ;;  %v1185_v49 = vadd.f32 %v1183_v41, %v1181_v62  ;;  %v1806_v26 = vpop.eup %1805 }
 0x4cf   :  { %v1808_v52 = vpop.eup %1807  ;;  %v1171_v53 = vadd.f32 1.0, %v1806_v26 }
 0x4d0   :  { %v1182_v50 = vadd.f32 %v1180_v48, %v1178_v39  ;;  %1193 = vst [vmem:[#allocation17] sm:$0xff] %v1185_v49  ;;  %1809 = vtanh.f32 %v1185_v49 }
 0x4d2   :  { %v1186_v51 = vadd.f32 %v1184_v10, %v1182_v50 }
 0x4d4   :  { %1811 = vtanh.f32 %v1186_v51  ;;  %1194 = vst [vmem:[#allocation17 + $0x8] sm:$0xff] %v1186_v51 }
 0x4d5   :  { %2000 = shalt.err (!%p1997_p12)
}
 0x4d6   :  { %s2001_s19 = scalar_lea.hbm %s2381_s14, 256 }
 0x4d7   :  { %p2002_p13 = scmp.ne.s32.totalorder %s2381_s14, %s2001_s19  ;;  %p2005_p0 = scmp.lt.u32.totalorder %s2001_s19, %s2381_s14 }
 0x4d9   :  { %p2007_p1 = pnand %p2005_p0, %p2002_p13 }
 0x4db   :  { %2010 = shalt.err (!%p2007_p1)
}
 0x4dc   :  { %1218 = dma.vmem_to_hbm [thread:$0]  %s1213_s5, 256, %s2381_s14, [#allocation18], %s2049_s25, %s2049_s25, %s2050_s26   ;;  %v1173_v54 = vmul.f32 0.5, %v1171_v53  ;;  %v1172_v55 = vadd.f32 1.0, %v1808_v52  ;;  %v1810_v56 = vpop.eup %1809 }
 0x4dd   :  { %s2061_s23 = smov [#allocation16]  }
 0x4de   :  { %v1189_v31 = vmul.f32 %v1810_v56, %v1173_v54  ;;  %s1200_s9 = sshll.u32 %s2061_s23, 4  ;;  %v1174_v57 = vmul.f32 0.5, %v1172_v55  ;;  %v1812_v58 = vpop.eup %1811  ;;  %s1201_s9 = int_to_ptr.vmem [resolvable:$true] %s1200_s9 }
 0x4df   :  { %s2011_s30 = scalar_lea.vmem %s1201_s9, 256  ;;  %p2016_p3 = scmp.lt.s32.totalorder %s1201_s9, %s1201_s9 }
 0x4e0   :  { %1191 = vst [vmem:[#allocation16] sm:$0xff] %v1189_v31  ;;  %v1190_v60 = vmul.f32 %v1812_v58, %v1174_v57  ;;  %p2012_p2 = scmp.ne.s32.totalorder %s1201_s9, %s2011_s30  ;;  %p2017_p4 = scmp.lt.s32.totalorder %s2011_s30, %s2011_s30 }
 0x4e2   :  { %1192 = vst [vmem:[#allocation16 + $0x8] sm:$0xff] %v1190_v60  ;;  %p2018_p5 = por %p2017_p4, %p2016_p3 }
 0x4e4   :  { %p2019_p6 = pnand %p2018_p5, %p2012_p2 }
 0x4e6   :  { %2022 = shalt.err (!%p2019_p6)
}
 0x4e7   :  { %s2023_s0 = scalar_lea.hbm %s2380_s13, 256 }
 0x4e8   :  { %p2024_p7 = scmp.ne.s32.totalorder %s2380_s13, %s2023_s0  ;;  %p2027_p8 = scmp.lt.u32.totalorder %s2023_s0, %s2380_s13 }
 0x4ea   :  { %p2029_p9 = pnand %p2027_p8, %p2024_p7 }
 0x4ec   :  { %2032 = shalt.err (!%p2029_p9)
}
 0x4ed   :  { %1206 = dma.vmem_to_hbm [thread:$0]  %s1201_s9, 256, %s2380_s13, [#allocation4], %s2049_s25, %s2049_s25, %s2050_s26  }
 0x4ee   :  { %2043 = dma.done.wait [#allocation4], 256  }
 0x4ef   :  { %2044 = vsyncadd [#allocation4], 4294967040 }
 0x4f0   :  { %2045 = dma.done.wait [#allocation18], 256  }
 0x4f1   :  { %2046 = vsyncadd [#allocation18], 4294967040 }
 0x4f2   :  { %1225 = vsyncpa [#allocation3], 1 }
 0x4f3   :  { %1226 = vsyncpa [#allocation6], 1 }
 0x4f4   :  { %1227 = vsyncpa [#allocation9], 1 }
 0x4f5   :  { %1228 = vsyncpa [#allocation12], 1 }
 0x4f6   :  { %1229 = vsyncpa [#allocation15], 1 }
 0x4f7   :  { %1230 = vsyncpa [#allocation4], 1 }
 0x4f8   :  { %1231 = vsyncpa [#allocation18], 1 }

</bundles_post_ra>
